<compile_context>
chip_gen: v7x
topology: tpu7x:2x2x1
jax: 0.10.0
libtpu: 0.0.40
codegen_flags: <defaults>
</compile_context>

<pallas_src>
import math
import functools

import jax
import jax.numpy as jnp
from jax import lax
from jax.experimental import pallas as pl
from jax.experimental.pallas import tpu as pltpu


def _mha_rule_kernel(q_ref, k_ref, v_ref,
                     wq_ref, bq_ref, wk_ref, bk_ref, wv_ref, bv_ref,
                     wo_ref, bo_ref,
                     out_ref, *rest,
                     num_heads, need_weights):
    f32 = jnp.float32
    bf16 = jnp.bfloat16

    if need_weights:
        attw_ref, q_scr, k_scr, v_scr, ctx_scr = rest
    else:
        q_scr, k_scr, v_scr, ctx_scr = rest
        attw_ref = None

    bt, lq, E = q_ref.shape
    _, lk, _ = k_ref.shape
    Dh = E // num_heads

    # ---- Fused (pre-proj o in-proj) projections on the flattened (bt*L, E)
    # slab (one big-M GEMM each).  Weights arrive pre-transposed (in, out) in
    # bf16; the query weight already carries the 1/sqrt(Dh) scale.  Results
    # land in bf16 VMEM scratch so the batch loop slices Refs, not vregs.
    q2 = q_ref[...].reshape(bt * lq, E)
    k2 = k_ref[...].reshape(bt * lk, E)
    v2 = v_ref[...].reshape(bt * lk, E)

    q_scr[...] = (jnp.dot(q2, wq_ref[...], preferred_element_type=f32)
                  + bq_ref[...]).astype(bf16)
    k_scr[...] = (jnp.dot(k2, wk_ref[...], preferred_element_type=f32)
                  + bk_ref[...]).astype(bf16)
    v_scr[...] = (jnp.dot(v2, wv_ref[...], preferred_element_type=f32)
                  + bv_ref[...]).astype(bf16)

    Wo = wo_ref[...]          # (E, E) bf16, pre-transposed
    bo = bo_ref[...]          # (1, E) f32
    inv_heads = 1.0 / num_heads

    def body(b, carry):
        qo = pl.multiple_of(b * lq, lq)
        ko = pl.multiple_of(b * lk, lk)

        attw_acc = jnp.zeros((lq, lk), f32) if need_weights else None

        for h in range(num_heads):                       # small, static
            lo = h * Dh
            hi = lo + Dh
            Qh = q_scr[pl.ds(qo, lq), lo:hi]             # (lq, Dh) bf16
            Kh = k_scr[pl.ds(ko, lk), lo:hi]             # (lk, Dh) bf16
            Vh = v_scr[pl.ds(ko, lk), lo:hi]             # (lk, Dh) bf16

            # Q @ K.T without an in-kernel transpose (contract last dims).
            s = lax.dot_general(Qh, Kh, (((1,), (1,)), ((), ())),
                                preferred_element_type=f32)
            s = s - jnp.max(s, axis=-1, keepdims=True)
            e = jnp.exp(s)
            inv = pl.reciprocal(jnp.sum(e, axis=-1, keepdims=True), approx=True)

            if need_weights:
                p = e * inv
                attw_acc = attw_acc + p
                ctx_h = jnp.dot(p.astype(bf16), Vh, preferred_element_type=f32)
            else:
                # Deferred normalization: one (lq, Dh) scale instead of (lq, lk).
                ctx_h = jnp.dot(e.astype(bf16), Vh, preferred_element_type=f32) * inv

            # Lane-offset store into the context slab (no XLU concat).
            ctx_scr[:, lo:hi] = ctx_h.astype(bf16)

        # One full-depth (K=E) out-projection GEMM per batch row.
        out_b = jnp.dot(ctx_scr[...], Wo, preferred_element_type=f32) + bo
        out_ref[b] = out_b.astype(out_ref.dtype)
        if need_weights:
            attw_ref[b] = (attw_acc * inv_heads).astype(attw_ref.dtype)
        return carry

    lax.fori_loop(0, bt, body, 0)


def _vmem_capacity_bytes():
    try:
        info = pltpu.get_tpu_info()
        return int(getattr(info, "vmem_capacity_bytes", 64 << 20))
    except Exception:
        return 64 << 20     # conservative (v7x-class) fallback


def multi_att_rule(q, k, v, params, *, num_heads, need_weights=True,
                   batch_tile=None, out_dtype=jnp.float32):
    """Pallas implementation of MultiAttRule.forward.

    Returns (attn_output, attn_weights) when need_weights=True (PyTorch
    default: weights averaged over heads), else just attn_output
    (the fast path: no (B,Lq,Lk) writeback, deferred softmax normalization).
    """
    B, Lq, E = q.shape
    Bk, Lk, Ek = k.shape
    assert Bk == B and Ek == E and E % num_heads == 0
    Dh = E // num_heads
    scale = 1.0 / math.sqrt(Dh)
    f32, bf16 = jnp.float32, jnp.bfloat16

    # ---- host-side fusion: (w_* Linear) o (in-projection) -> one GEMM each.
    #   Q = ((q @ Wq.T + bq) @ Wiq.T + biq) = q @ (Wiq @ Wq).T + (Wiq @ bq + biq)
    def fuse(w_pre, b_pre, w_in, b_in):
        return w_in @ w_pre, w_in @ b_pre + b_in

    wq_f, bq_f = fuse(params["w_q_w"], params["w_q_b"], params["in_q_w"], params["in_q_b"])
    wk_f, bk_f = fuse(params["w_k_w"], params["w_k_b"], params["in_k_w"], params["in_k_b"])
    wv_f, bv_f = fuse(params["w_v_w"], params["w_v_b"], params["in_v_w"], params["in_v_b"])
    wq_f, bq_f = wq_f * scale, bq_f * scale          # fold 1/sqrt(Dh) into Q path

    # Pre-transpose to (in, out) so the kernel never transposes a VMEM tile;
    # weights go bf16 (MXU-native, half the weight DMA), biases stay f32.
    wq_t = wq_f.T.astype(bf16)
    wk_t = wk_f.T.astype(bf16)
    wv_t = wv_f.T.astype(bf16)
    wo_t = params["out_w"].T.astype(bf16)
    row = lambda x: x.reshape(1, E).astype(f32)
    bq2, bk2, bv2, bo2 = row(bq_f), row(bk_f), row(bv_f), row(params["out_b"])

    # Activations in bf16: halves input DMA, removes an in-kernel cast pass.
    q = q.astype(bf16)
    k = k.astype(bf16)
    v = v.astype(bf16)

    # ---- generation-aware batch tile + VMEM budget.
    vmem_cap = _vmem_capacity_bytes()
    multi_tc = vmem_cap < (128 << 20)           # v7x-class: 64 MiB VMEM, 2 TCs
    budget = (40 << 20) if multi_tc else (80 << 20)

    out_bytes = jnp.dtype(out_dtype).itemsize
    per_b = (2 * 2 * (Lq + 2 * Lk) * E          # double-buffered bf16 input blocks
             + 2 * (Lq + 2 * Lk) * E            # projected Q/K/V bf16 scratch
             + 2 * out_bytes * Lq * E           # double-buffered output block
             + (2 * 4 * Lq * Lk if need_weights else 0))   # attw output block
    fixed = (2 * 4 * E * E + 2 * 8 * 4 * E      # weights (bf16, x2 buffers) + biases
             + 2 * Lq * E                       # ctx scratch (bf16)
             + 4 * 4 * Lq * Lk + 2 * 4 * Lq * E)  # in-flight f32 temporaries (rough)

    if batch_tile is None:
        if (Lq % 8) or (Lk % 8):
            bt = 1   # in-kernel (bt,L,E)->(bt*L,E) reshape needs L % 8 == 0
        else:
            bt = max(1, min(B, (budget - fixed) // max(per_b, 1)))
            if multi_tc:
                # keep >= 2 grid steps so both TensorCores get work
                while bt > 1 and B // bt < 2:
                    bt -= 1
            while B % bt:
                bt -= 1
    else:
        bt = batch_tile
        assert B % bt == 0
    grid = (B // bt,)

    # Scoped VMEM limit: honest working-set estimate, clamped below physical
    # capacity (leaves ~8 MiB headroom on v7x's 64 MiB).
    est = fixed + bt * per_b + (4 << 20)
    vmem_limit = int(min(vmem_cap - (8 << 20), max(32 << 20, est)))

    weights = [wq_t, bq2, wk_t, bk2, wv_t, bv2, wo_t, bo2]
    full = lambda shape: pl.BlockSpec(shape, lambda i: (0,) * len(shape))

    in_specs = [
        pl.BlockSpec((bt, Lq, E), lambda i: (i, 0, 0)),
        pl.BlockSpec((bt, Lk, E), lambda i: (i, 0, 0)),
        pl.BlockSpec((bt, Lk, E), lambda i: (i, 0, 0)),
    ] + [full(w.shape) for w in weights]

    out_spec_o = pl.BlockSpec((bt, Lq, E), lambda i: (i, 0, 0))
    out_shape_o = jax.ShapeDtypeStruct((B, Lq, E), out_dtype)
    if need_weights:
        out_specs = (out_spec_o,
                     pl.BlockSpec((bt, Lq, Lk), lambda i: (i, 0, 0)))
        out_shape = (out_shape_o,
                     jax.ShapeDtypeStruct((B, Lq, Lk), jnp.float32))
    else:
        out_specs = out_spec_o
        out_shape = out_shape_o

    scratch_shapes = [
        pltpu.VMEM((bt * Lq, E), bf16),     # projected Q
        pltpu.VMEM((bt * Lk, E), bf16),     # projected K
        pltpu.VMEM((bt * Lk, E), bf16),     # projected V
        pltpu.VMEM((Lq, E), bf16),          # per-row context slab
    ]

    kernel = functools.partial(_mha_rule_kernel, num_heads=num_heads,
                               need_weights=need_weights)

    return pl.pallas_call(
        kernel,
        out_shape=out_shape,
        grid_spec=pltpu.PrefetchScalarGridSpec(
            num_scalar_prefetch=0,
            grid=grid,
            in_specs=in_specs,
            out_specs=out_specs,
            scratch_shapes=scratch_shapes,
        ),
        compiler_params=pltpu.CompilerParams(
            dimension_semantics=("parallel",),
            vmem_limit_bytes=vmem_limit),
    )(q, k, v, *weights)


def _reference(q, k, v, params, *, num_heads):
    """Pure-JAX f32 reference matching torch.nn.MultiheadAttention semantics."""
    def lin(x, w, b):
        return x @ w.T + b

    qp = lin(q, params["w_q_w"], params["w_q_b"])
    kp = lin(k, params["w_k_w"], params["w_k_b"])
    vp = lin(v, params["w_v_w"], params["w_v_b"])

    Q = lin(qp, params["in_q_w"], params["in_q_b"])
    K = lin(kp, params["in_k_w"], params["in_k_b"])
    V = lin(vp, params["in_v_w"], params["in_v_b"])

    B, Lq, E = Q.shape
    Lk = K.shape[1]
    Dh = E // num_heads
    Qh = Q.reshape(B, Lq, num_heads, Dh).transpose(0, 2, 1, 3)
    Kh = K.reshape(B, Lk, num_heads, Dh).transpose(0, 2, 1, 3)
    Vh = V.reshape(B, Lk, num_heads, Dh).transpose(0, 2, 1, 3)

    s = jnp.einsum("bhqd,bhkd->bhqk", Qh, Kh) / math.sqrt(Dh)
    p = jax.nn.softmax(s, axis=-1)
    ctx = jnp.einsum("bhqk,bhkd->bhqd", p, Vh)
    ctx = ctx.transpose(0, 2, 1, 3).reshape(B, Lq, E)
    out = lin(ctx, params["out_w"], params["out_b"])
    return out, p.mean(axis=1)


def _init_params(key, hid_dim):
    ks = jax.random.split(key, 14)
    s = 1.0 / math.sqrt(hid_dim)
    u = lambda k, shape: jax.random.uniform(k, shape, jnp.float32, -s, s)
    return {
        # pre-projection Linear layers
        "w_q_w": u(ks[0], (hid_dim, hid_dim)), "w_q_b": u(ks[1], (hid_dim,)),
        "w_k_w": u(ks[2], (hid_dim, hid_dim)), "w_k_b": u(ks[3], (hid_dim,)),
        # MultiheadAttention in-projections (rows of in_proj_weight) + biases
        "w_v_w": u(ks[4], (hid_dim, hid_dim)), "w_v_b": u(ks[5], (hid_dim,)),
        "in_q_w": u(ks[6], (hid_dim, hid_dim)), "in_q_b": u(ks[7], (hid_dim,)),
        "in_k_w": u(ks[8], (hid_dim, hid_dim)), "in_k_b": u(ks[9], (hid_dim,)),
        "in_v_w": u(ks[10], (hid_dim, hid_dim)), "in_v_b": u(ks[11], (hid_dim,)),
        # out_proj
        "out_w": u(ks[12], (hid_dim, hid_dim)), "out_b": u(ks[13], (hid_dim,)),
    }


if __name__ == "__main__":
    B, L, E, H = 2, 8, 32, 4

    key = jax.random.PRNGKey(0)
    kq, kk, kv, kp = jax.random.split(key, 4)
    q = jax.random.normal(kq, (B, L, E), jnp.float32)
    k = jax.random.normal(kk, (B, L, E), jnp.float32)
    v = jax.random.normal(kv, (B, L, E), jnp.float32)
    params = _init_params(kp, E)

    out, attw = multi_att_rule(q, k, v, params, num_heads=H, need_weights=True)
    jax.block_until_ready((out, attw))

    out_only = multi_att_rule(q, k, v, params, num_heads=H, need_weights=False)
    jax.block_until_ready(out_only)

    ref_out, ref_attw = _reference(q, k, v, params, num_heads=H)

    # bf16 activations/weights + approx EUP reciprocal -> loosened tolerance
    # vs the pure-f32 reference (observed error ~1e-3 at these shapes).
    assert jnp.allclose(out, ref_out, atol=3e-2, rtol=3e-2)
    assert jnp.allclose(attw, ref_attw, atol=3e-2, rtol=3e-2)
    assert jnp.allclose(out_only, ref_out, atol=3e-2, rtol=3e-2)

    print("KERNEL_OK")
</pallas_src>

<mosaic_0001>
module attributes {stable_mosaic.version = 11 : i64} {
  func.func @_mha_rule_kernel(%arg0: i32, %arg1: memref<1x8x32xbf16, #tpu.memory_space<vmem>>, %arg2: memref<1x8x32xbf16, #tpu.memory_space<vmem>>, %arg3: memref<1x8x32xbf16, #tpu.memory_space<vmem>>, %arg4: memref<32x32xbf16, #tpu.memory_space<vmem>>, %arg5: memref<1x32xf32, #tpu.memory_space<vmem>>, %arg6: memref<32x32xbf16, #tpu.memory_space<vmem>>, %arg7: memref<1x32xf32, #tpu.memory_space<vmem>>, %arg8: memref<32x32xbf16, #tpu.memory_space<vmem>>, %arg9: memref<1x32xf32, #tpu.memory_space<vmem>>, %arg10: memref<32x32xbf16, #tpu.memory_space<vmem>>, %arg11: memref<1x32xf32, #tpu.memory_space<vmem>>, %arg12: memref<1x8x32xf32, #tpu.memory_space<vmem>>, %arg13: memref<1x8x8xf32, #tpu.memory_space<vmem>>, %arg14: memref<8x32xbf16, #tpu.memory_space<vmem>>, %arg15: memref<8x32xbf16, #tpu.memory_space<vmem>>, %arg16: memref<8x32xbf16, #tpu.memory_space<vmem>>, %arg17: memref<8x32xbf16, #tpu.memory_space<vmem>>) attributes {dimension_semantics = [#tpu.dimension_semantics<parallel>], iteration_bounds = array<i64: 2>, scalar_prefetch = 0 : i64, scratch_operands = 4 : i64, tpu.core_type = #tpu.core_type<tc>, window_params = [{transform_indices = @transform_0, window_bounds = array<i64: 1, 8, 32>}, {transform_indices = @transform_1, window_bounds = array<i64: 1, 8, 32>}, {transform_indices = @transform_2, window_bounds = array<i64: 1, 8, 32>}, {pipeline_mode = #tpu.pipeline_mode<synchronous>, transform_indices = @transform_3, window_bounds = array<i64: 32, 32>}, {pipeline_mode = #tpu.pipeline_mode<synchronous>, transform_indices = @transform_4, window_bounds = array<i64: 1, 32>}, {pipeline_mode = #tpu.pipeline_mode<synchronous>, transform_indices = @transform_5, window_bounds = array<i64: 32, 32>}, {pipeline_mode = #tpu.pipeline_mode<synchronous>, transform_indices = @transform_6, window_bounds = array<i64: 1, 32>}, {pipeline_mode = #tpu.pipeline_mode<synchronous>, transform_indices = @transform_7, window_bounds = array<i64: 32, 32>}, {pipeline_mode = #tpu.pipeline_mode<synchronous>, transform_indices = @transform_8, window_bounds = array<i64: 1, 32>}, {pipeline_mode = #tpu.pipeline_mode<synchronous>, transform_indices = @transform_9, window_bounds = array<i64: 32, 32>}, {pipeline_mode = #tpu.pipeline_mode<synchronous>, transform_indices = @transform_10, window_bounds = array<i64: 1, 32>}, {transform_indices = @transform_11, window_bounds = array<i64: 1, 8, 32>}, {transform_indices = @transform_12, window_bounds = array<i64: 1, 8, 8>}]} {
    %c0 = arith.constant 0 : index
    %c0_0 = arith.constant 0 : index
    %c0_1 = arith.constant 0 : index
    %0 = vector.load %arg1[%c0, %c0_0, %c0_1] : memref<1x8x32xbf16, #tpu.memory_space<vmem>>, vector<1x8x32xbf16>
    %1 = vector.shape_cast %0 : vector<1x8x32xbf16> to vector<8x32xbf16>
    %c0_2 = arith.constant 0 : index
    %c0_3 = arith.constant 0 : index
    %c0_4 = arith.constant 0 : index
    %2 = vector.load %arg2[%c0_2, %c0_3, %c0_4] : memref<1x8x32xbf16, #tpu.memory_space<vmem>>, vector<1x8x32xbf16>
    %3 = vector.shape_cast %2 : vector<1x8x32xbf16> to vector<8x32xbf16>
    %c0_5 = arith.constant 0 : index
    %c0_6 = arith.constant 0 : index
    %c0_7 = arith.constant 0 : index
    %4 = vector.load %arg3[%c0_5, %c0_6, %c0_7] : memref<1x8x32xbf16, #tpu.memory_space<vmem>>, vector<1x8x32xbf16>
    %5 = vector.shape_cast %4 : vector<1x8x32xbf16> to vector<8x32xbf16>
    %c0_8 = arith.constant 0 : index
    %c0_9 = arith.constant 0 : index
    %6 = vector.load %arg4[%c0_8, %c0_9] : memref<32x32xbf16, #tpu.memory_space<vmem>>, vector<32x32xbf16>
    %cst = arith.constant dense<0.000000e+00> : vector<8x32xf32>
    %7 = tpu.matmul %1, %6, %cst {dimension_numbers = #tpu.dot_dimension_numbers<[1], [0], [0], [1], [0, 0, 1, 1], [], []>} : vector<8x32xbf16>, vector<32x32xbf16>, vector<8x32xf32> -> vector<8x32xf32>
    %c0_10 = arith.constant 0 : index
    %c0_11 = arith.constant 0 : index
    %8 = vector.load %arg5[%c0_10, %c0_11] : memref<1x32xf32, #tpu.memory_space<vmem>>, vector<1x32xf32>
    %9 = vector.broadcast %8 : vector<1x32xf32> to vector<8x32xf32>
    %10 = arith.addf %7, %9 : vector<8x32xf32>
    %11 = arith.truncf %10 : vector<8x32xf32> to vector<8x32xbf16>
    %c0_12 = arith.constant 0 : index
    %c0_13 = arith.constant 0 : index
    %12 = vector.load %arg14[%c0_12, %c0_13] : memref<8x32xbf16, #tpu.memory_space<vmem>>, vector<8x32xbf16>
    tpu.vector_store %arg14[%c0_12, %c0_13], %11 {strides = array<i32>} : memref<8x32xbf16, #tpu.memory_space<vmem>>, vector<8x32xbf16>,
    %c0_14 = arith.constant 0 : index
    %c0_15 = arith.constant 0 : index
    %13 = vector.load %arg6[%c0_14, %c0_15] : memref<32x32xbf16, #tpu.memory_space<vmem>>, vector<32x32xbf16>
    %cst_16 = arith.constant dense<0.000000e+00> : vector<8x32xf32>
    %14 = tpu.matmul %3, %13, %cst_16 {dimension_numbers = #tpu.dot_dimension_numbers<[1], [0], [0], [1], [0, 0, 1, 1], [], []>} : vector<8x32xbf16>, vector<32x32xbf16>, vector<8x32xf32> -> vector<8x32xf32>
    %c0_17 = arith.constant 0 : index
    %c0_18 = arith.constant 0 : index
    %15 = vector.load %arg7[%c0_17, %c0_18] : memref<1x32xf32, #tpu.memory_space<vmem>>, vector<1x32xf32>
    %16 = vector.broadcast %15 : vector<1x32xf32> to vector<8x32xf32>
    %17 = arith.addf %14, %16 : vector<8x32xf32>
    %18 = arith.truncf %17 : vector<8x32xf32> to vector<8x32xbf16>
    %c0_19 = arith.constant 0 : index
    %c0_20 = arith.constant 0 : index
    %19 = vector.load %arg15[%c0_19, %c0_20] : memref<8x32xbf16, #tpu.memory_space<vmem>>, vector<8x32xbf16>
    tpu.vector_store %arg15[%c0_19, %c0_20], %18 {strides = array<i32>} : memref<8x32xbf16, #tpu.memory_space<vmem>>, vector<8x32xbf16>,
    %c0_21 = arith.constant 0 : index
    %c0_22 = arith.constant 0 : index
    %20 = vector.load %arg8[%c0_21, %c0_22] : memref<32x32xbf16, #tpu.memory_space<vmem>>, vector<32x32xbf16>
    %cst_23 = arith.constant dense<0.000000e+00> : vector<8x32xf32>
    %21 = tpu.matmul %5, %20, %cst_23 {dimension_numbers = #tpu.dot_dimension_numbers<[1], [0], [0], [1], [0, 0, 1, 1], [], []>} : vector<8x32xbf16>, vector<32x32xbf16>, vector<8x32xf32> -> vector<8x32xf32>
    %c0_24 = arith.constant 0 : index
    %c0_25 = arith.constant 0 : index
    %22 = vector.load %arg9[%c0_24, %c0_25] : memref<1x32xf32, #tpu.memory_space<vmem>>, vector<1x32xf32>
    %23 = vector.broadcast %22 : vector<1x32xf32> to vector<8x32xf32>
    %24 = arith.addf %21, %23 : vector<8x32xf32>
    %25 = arith.truncf %24 : vector<8x32xf32> to vector<8x32xbf16>
    %c0_26 = arith.constant 0 : index
    %c0_27 = arith.constant 0 : index
    %26 = vector.load %arg16[%c0_26, %c0_27] : memref<8x32xbf16, #tpu.memory_space<vmem>>, vector<8x32xbf16>
    tpu.vector_store %arg16[%c0_26, %c0_27], %25 {strides = array<i32>} : memref<8x32xbf16, #tpu.memory_space<vmem>>, vector<8x32xbf16>,
    %c0_28 = arith.constant 0 : index
    %c0_29 = arith.constant 0 : index
    %27 = vector.load %arg10[%c0_28, %c0_29] : memref<32x32xbf16, #tpu.memory_space<vmem>>, vector<32x32xbf16>
    %c0_30 = arith.constant 0 : index
    %c0_31 = arith.constant 0 : index
    %28 = vector.load %arg11[%c0_30, %c0_31] : memref<1x32xf32, #tpu.memory_space<vmem>>, vector<1x32xf32>
    %c0_i32 = arith.constant 0 : i32
    %c8_i32 = arith.constant 8 : i32
    %29 = arith.muli %c0_i32, %c8_i32 : i32
    %30 = tpu.assume_multiple %29, 8 : i32
    %c8_i32_32 = arith.constant 8 : i32
    %31 = arith.muli %c0_i32, %c8_i32_32 : i32
    %32 = tpu.assume_multiple %31, 8 : i32
    %cst_33 = arith.constant 0.000000e+00 : f32
    %33 = vector.broadcast %cst_33 : f32 to vector<8x8xf32>
    %34 = arith.index_cast %30 : i32 to index
    %c0_34 = arith.constant 0 : index
    %35 = vector.load %arg14[%34, %c0_34] : memref<8x32xbf16, #tpu.memory_space<vmem>>, vector<8x8xbf16>
    %36 = arith.index_cast %32 : i32 to index
    %c0_35 = arith.constant 0 : index
    %37 = vector.load %arg15[%36, %c0_35] : memref<8x32xbf16, #tpu.memory_space<vmem>>, vector<8x8xbf16>
    %38 = arith.index_cast %32 : i32 to index
    %c0_36 = arith.constant 0 : index
    %39 = vector.load %arg16[%38, %c0_36] : memref<8x32xbf16, #tpu.memory_space<vmem>>, vector<8x8xbf16>
    %cst_37 = arith.constant dense<0.000000e+00> : vector<8x8xf32>
    %40 = tpu.matmul %35, %37, %cst_37 {dimension_numbers = #tpu.dot_dimension_numbers<[1], [1], [0], [0], [0, 0, 1, 0], [], []>} : vector<8x8xbf16>, vector<8x8xbf16>, vector<8x8xf32> -> vector<8x8xf32>
    %cst_38 = arith.constant dense<0xFF800000> : vector<8xf32>
    %41 = vector.multi_reduction <maximumf>, %40, %cst_38 [1] : vector<8x8xf32> to vector<8xf32>
    %42 = vector.shape_cast %41 : vector<8xf32> to vector<8x1xf32>
    %43 = vector.broadcast %42 : vector<8x1xf32> to vector<8x8xf32>
    %44 = arith.subf %40, %43 : vector<8x8xf32>
    %45 = math.exp %44 : vector<8x8xf32>
    %cst_39 = arith.constant dense<0.000000e+00> : vector<8xf32>
    %46 = vector.multi_reduction <add>, %45, %cst_39 [1] : vector<8x8xf32> to vector<8xf32>
    %47 = vector.shape_cast %46 : vector<8xf32> to vector<8x1xf32>
    %48 = tpu.reciprocal %47 {approx = true} : vector<8x1xf32> -> vector<8x1xf32>
    %49 = vector.broadcast %48 : vector<8x1xf32> to vector<8x8xf32>
    %50 = arith.mulf %45, %49 : vector<8x8xf32>
    %51 = arith.addf %33, %50 : vector<8x8xf32>
    %52 = arith.truncf %50 : vector<8x8xf32> to vector<8x8xbf16>
    %cst_40 = arith.constant dense<0.000000e+00> : vector<8x8xf32>
    %53 = tpu.matmul %52, %39, %cst_40 {dimension_numbers = #tpu.dot_dimension_numbers<[1], [0], [0], [1], [0, 0, 1, 1], [], []>} : vector<8x8xbf16>, vector<8x8xbf16>, vector<8x8xf32> -> vector<8x8xf32>
    %54 = arith.truncf %53 : vector<8x8xf32> to vector<8x8xbf16>
    %c0_41 = arith.constant 0 : index
    %c0_42 = arith.constant 0 : index
    %55 = vector.load %arg17[%c0_41, %c0_42] : memref<8x32xbf16, #tpu.memory_space<vmem>>, vector<8x8xbf16>
    tpu.vector_store %arg17[%c0_41, %c0_42], %54 {strides = array<i32>} : memref<8x32xbf16, #tpu.memory_space<vmem>>, vector<8x8xbf16>,
    %56 = arith.index_cast %30 : i32 to index
    %c8 = arith.constant 8 : index
    %57 = vector.load %arg14[%56, %c8] : memref<8x32xbf16, #tpu.memory_space<vmem>>, vector<8x8xbf16>
    %58 = arith.index_cast %32 : i32 to index
    %c8_43 = arith.constant 8 : index
    %59 = vector.load %arg15[%58, %c8_43] : memref<8x32xbf16, #tpu.memory_space<vmem>>, vector<8x8xbf16>
    %60 = arith.index_cast %32 : i32 to index
    %c8_44 = arith.constant 8 : index
    %61 = vector.load %arg16[%60, %c8_44] : memref<8x32xbf16, #tpu.memory_space<vmem>>, vector<8x8xbf16>
    %cst_45 = arith.constant dense<0.000000e+00> : vector<8x8xf32>
    %62 = tpu.matmul %57, %59, %cst_45 {dimension_numbers = #tpu.dot_dimension_numbers<[1], [1], [0], [0], [0, 0, 1, 0], [], []>} : vector<8x8xbf16>, vector<8x8xbf16>, vector<8x8xf32> -> vector<8x8xf32>
    %cst_46 = arith.constant dense<0xFF800000> : vector<8xf32>
    %63 = vector.multi_reduction <maximumf>, %62, %cst_46 [1] : vector<8x8xf32> to vector<8xf32>
    %64 = vector.shape_cast %63 : vector<8xf32> to vector<8x1xf32>
    %65 = vector.broadcast %64 : vector<8x1xf32> to vector<8x8xf32>
    %66 = arith.subf %62, %65 : vector<8x8xf32>
    %67 = math.exp %66 : vector<8x8xf32>
    %cst_47 = arith.constant dense<0.000000e+00> : vector<8xf32>
    %68 = vector.multi_reduction <add>, %67, %cst_47 [1] : vector<8x8xf32> to vector<8xf32>
    %69 = vector.shape_cast %68 : vector<8xf32> to vector<8x1xf32>
    %70 = tpu.reciprocal %69 {approx = true} : vector<8x1xf32> -> vector<8x1xf32>
    %71 = vector.broadcast %70 : vector<8x1xf32> to vector<8x8xf32>
    %72 = arith.mulf %67, %71 : vector<8x8xf32>
    %73 = arith.addf %51, %72 : vector<8x8xf32>
    %74 = arith.truncf %72 : vector<8x8xf32> to vector<8x8xbf16>
    %cst_48 = arith.constant dense<0.000000e+00> : vector<8x8xf32>
    %75 = tpu.matmul %74, %61, %cst_48 {dimension_numbers = #tpu.dot_dimension_numbers<[1], [0], [0], [1], [0, 0, 1, 1], [], []>} : vector<8x8xbf16>, vector<8x8xbf16>, vector<8x8xf32> -> vector<8x8xf32>
    %76 = arith.truncf %75 : vector<8x8xf32> to vector<8x8xbf16>
    %c0_49 = arith.constant 0 : index
    %c8_50 = arith.constant 8 : index
    %77 = vector.load %arg17[%c0_49, %c8_50] : memref<8x32xbf16, #tpu.memory_space<vmem>>, vector<8x8xbf16>
    tpu.vector_store %arg17[%c0_49, %c8_50], %76 {strides = array<i32>} : memref<8x32xbf16, #tpu.memory_space<vmem>>, vector<8x8xbf16>,
    %78 = arith.index_cast %30 : i32 to index
    %c16 = arith.constant 16 : index
    %79 = vector.load %arg14[%78, %c16] : memref<8x32xbf16, #tpu.memory_space<vmem>>, vector<8x8xbf16>
    %80 = arith.index_cast %32 : i32 to index
    %c16_51 = arith.constant 16 : index
    %81 = vector.load %arg15[%80, %c16_51] : memref<8x32xbf16, #tpu.memory_space<vmem>>, vector<8x8xbf16>
    %82 = arith.index_cast %32 : i32 to index
    %c16_52 = arith.constant 16 : index
    %83 = vector.load %arg16[%82, %c16_52] : memref<8x32xbf16, #tpu.memory_space<vmem>>, vector<8x8xbf16>
    %cst_53 = arith.constant dense<0.000000e+00> : vector<8x8xf32>
    %84 = tpu.matmul %79, %81, %cst_53 {dimension_numbers = #tpu.dot_dimension_numbers<[1], [1], [0], [0], [0, 0, 1, 0], [], []>} : vector<8x8xbf16>, vector<8x8xbf16>, vector<8x8xf32> -> vector<8x8xf32>
    %cst_54 = arith.constant dense<0xFF800000> : vector<8xf32>
    %85 = vector.multi_reduction <maximumf>, %84, %cst_54 [1] : vector<8x8xf32> to vector<8xf32>
    %86 = vector.shape_cast %85 : vector<8xf32> to vector<8x1xf32>
    %87 = vector.broadcast %86 : vector<8x1xf32> to vector<8x8xf32>
    %88 = arith.subf %84, %87 : vector<8x8xf32>
    %89 = math.exp %88 : vector<8x8xf32>
    %cst_55 = arith.constant dense<0.000000e+00> : vector<8xf32>
    %90 = vector.multi_reduction <add>, %89, %cst_55 [1] : vector<8x8xf32> to vector<8xf32>
    %91 = vector.shape_cast %90 : vector<8xf32> to vector<8x1xf32>
    %92 = tpu.reciprocal %91 {approx = true} : vector<8x1xf32> -> vector<8x1xf32>
    %93 = vector.broadcast %92 : vector<8x1xf32> to vector<8x8xf32>
    %94 = arith.mulf %89, %93 : vector<8x8xf32>
    %95 = arith.addf %73, %94 : vector<8x8xf32>
    %96 = arith.truncf %94 : vector<8x8xf32> to vector<8x8xbf16>
    %cst_56 = arith.constant dense<0.000000e+00> : vector<8x8xf32>
    %97 = tpu.matmul %96, %83, %cst_56 {dimension_numbers = #tpu.dot_dimension_numbers<[1], [0], [0], [1], [0, 0, 1, 1], [], []>} : vector<8x8xbf16>, vector<8x8xbf16>, vector<8x8xf32> -> vector<8x8xf32>
    %98 = arith.truncf %97 : vector<8x8xf32> to vector<8x8xbf16>
    %c0_57 = arith.constant 0 : index
    %c16_58 = arith.constant 16 : index
    %99 = vector.load %arg17[%c0_57, %c16_58] : memref<8x32xbf16, #tpu.memory_space<vmem>>, vector<8x8xbf16>
    tpu.vector_store %arg17[%c0_57, %c16_58], %98 {strides = array<i32>} : memref<8x32xbf16, #tpu.memory_space<vmem>>, vector<8x8xbf16>,
    %100 = arith.index_cast %30 : i32 to index
    %c24 = arith.constant 24 : index
    %101 = vector.load %arg14[%100, %c24] : memref<8x32xbf16, #tpu.memory_space<vmem>>, vector<8x8xbf16>
    %102 = arith.index_cast %32 : i32 to index
    %c24_59 = arith.constant 24 : index
    %103 = vector.load %arg15[%102, %c24_59] : memref<8x32xbf16, #tpu.memory_space<vmem>>, vector<8x8xbf16>
    %104 = arith.index_cast %32 : i32 to index
    %c24_60 = arith.constant 24 : index
    %105 = vector.load %arg16[%104, %c24_60] : memref<8x32xbf16, #tpu.memory_space<vmem>>, vector<8x8xbf16>
    %cst_61 = arith.constant dense<0.000000e+00> : vector<8x8xf32>
    %106 = tpu.matmul %101, %103, %cst_61 {dimension_numbers = #tpu.dot_dimension_numbers<[1], [1], [0], [0], [0, 0, 1, 0], [], []>} : vector<8x8xbf16>, vector<8x8xbf16>, vector<8x8xf32> -> vector<8x8xf32>
    %cst_62 = arith.constant dense<0xFF800000> : vector<8xf32>
    %107 = vector.multi_reduction <maximumf>, %106, %cst_62 [1] : vector<8x8xf32> to vector<8xf32>
    %108 = vector.shape_cast %107 : vector<8xf32> to vector<8x1xf32>
    %109 = vector.broadcast %108 : vector<8x1xf32> to vector<8x8xf32>
    %110 = arith.subf %106, %109 : vector<8x8xf32>
    %111 = math.exp %110 : vector<8x8xf32>
    %cst_63 = arith.constant dense<0.000000e+00> : vector<8xf32>
    %112 = vector.multi_reduction <add>, %111, %cst_63 [1] : vector<8x8xf32> to vector<8xf32>
    %113 = vector.shape_cast %112 : vector<8xf32> to vector<8x1xf32>
    %114 = tpu.reciprocal %113 {approx = true} : vector<8x1xf32> -> vector<8x1xf32>
    %115 = vector.broadcast %114 : vector<8x1xf32> to vector<8x8xf32>
    %116 = arith.mulf %111, %115 : vector<8x8xf32>
    %117 = arith.addf %95, %116 : vector<8x8xf32>
    %118 = arith.truncf %116 : vector<8x8xf32> to vector<8x8xbf16>
    %cst_64 = arith.constant dense<0.000000e+00> : vector<8x8xf32>
    %119 = tpu.matmul %118, %105, %cst_64 {dimension_numbers = #tpu.dot_dimension_numbers<[1], [0], [0], [1], [0, 0, 1, 1], [], []>} : vector<8x8xbf16>, vector<8x8xbf16>, vector<8x8xf32> -> vector<8x8xf32>
    %120 = arith.truncf %119 : vector<8x8xf32> to vector<8x8xbf16>
    %c0_65 = arith.constant 0 : index
    %c24_66 = arith.constant 24 : index
    %121 = vector.load %arg17[%c0_65, %c24_66] : memref<8x32xbf16, #tpu.memory_space<vmem>>, vector<8x8xbf16>
    tpu.vector_store %arg17[%c0_65, %c24_66], %120 {strides = array<i32>} : memref<8x32xbf16, #tpu.memory_space<vmem>>, vector<8x8xbf16>,
    %c0_67 = arith.constant 0 : index
    %c0_68 = arith.constant 0 : index
    %122 = vector.load %arg17[%c0_67, %c0_68] : memref<8x32xbf16, #tpu.memory_space<vmem>>, vector<8x32xbf16>
    %cst_69 = arith.constant dense<0.000000e+00> : vector<8x32xf32>
    %123 = tpu.matmul %122, %27, %cst_69 {dimension_numbers = #tpu.dot_dimension_numbers<[1], [0], [0], [1], [0, 0, 1, 1], [], []>} : vector<8x32xbf16>, vector<32x32xbf16>, vector<8x32xf32> -> vector<8x32xf32>
    %124 = vector.broadcast %28 : vector<1x32xf32> to vector<8x32xf32>
    %125 = arith.addf %123, %124 : vector<8x32xf32>
    %126 = arith.index_cast %c0_i32 : i32 to index
    %c0_70 = arith.constant 0 : index
    %c0_71 = arith.constant 0 : index
    %127 = vector.load %arg12[%126, %c0_70, %c0_71] : memref<1x8x32xf32, #tpu.memory_space<vmem>>, vector<1x8x32xf32>
    %128 = vector.shape_cast %127 : vector<1x8x32xf32> to vector<8x32xf32>
    %129 = vector.shape_cast %125 : vector<8x32xf32> to vector<1x8x32xf32>
    tpu.vector_store %arg12[%126, %c0_70, %c0_71], %129 {strides = array<i32>} : memref<1x8x32xf32, #tpu.memory_space<vmem>>, vector<1x8x32xf32>,
    %cst_72 = arith.constant 2.500000e-01 : f32
    %130 = vector.broadcast %cst_72 : f32 to vector<8x8xf32>
    %131 = arith.mulf %117, %130 : vector<8x8xf32>
    %132 = arith.index_cast %c0_i32 : i32 to index
    %c0_73 = arith.constant 0 : index
    %c0_74 = arith.constant 0 : index
    %133 = vector.load %arg13[%132, %c0_73, %c0_74] : memref<1x8x8xf32, #tpu.memory_space<vmem>>, vector<1x8x8xf32>
    %134 = vector.shape_cast %133 : vector<1x8x8xf32> to vector<8x8xf32>
    %135 = vector.shape_cast %131 : vector<8x8xf32> to vector<1x8x8xf32>
    tpu.vector_store %arg13[%132, %c0_73, %c0_74], %135 {strides = array<i32>} : memref<1x8x8xf32, #tpu.memory_space<vmem>>, vector<1x8x8xf32>,
    %c1_i32 = arith.constant 1 : i32
    return
  }
  func.func @transform_0(%arg0: i32) -> (i32, i32, i32) {
    %c0_i32 = arith.constant 0 : i32
    %c0_i32_0 = arith.constant 0 : i32
    %c0_i32_1 = arith.constant 0 : i32
    return %arg0, %c0_i32, %c0_i32_0 : i32, i32, i32
  }
  func.func @transform_1(%arg0: i32) -> (i32, i32, i32) {
    %c0_i32 = arith.constant 0 : i32
    %c0_i32_0 = arith.constant 0 : i32
    %c0_i32_1 = arith.constant 0 : i32
    return %arg0, %c0_i32, %c0_i32_0 : i32, i32, i32
  }
  func.func @transform_2(%arg0: i32) -> (i32, i32, i32) {
    %c0_i32 = arith.constant 0 : i32
    %c0_i32_0 = arith.constant 0 : i32
    %c0_i32_1 = arith.constant 0 : i32
    return %arg0, %c0_i32, %c0_i32_0 : i32, i32, i32
  }
  func.func @transform_3(%arg0: i32) -> (i32, i32) {
    %c0_i32 = arith.constant 0 : i32
    %c0_i32_0 = arith.constant 0 : i32
    %c0_i32_1 = arith.constant 0 : i32
    return %c0_i32, %c0_i32_0 : i32, i32
  }
  func.func @transform_4(%arg0: i32) -> (i32, i32) {
    %c0_i32 = arith.constant 0 : i32
    %c0_i32_0 = arith.constant 0 : i32
    %c0_i32_1 = arith.constant 0 : i32
    return %c0_i32, %c0_i32_0 : i32, i32
  }
  func.func @transform_5(%arg0: i32) -> (i32, i32) {
    %c0_i32 = arith.constant 0 : i32
    %c0_i32_0 = arith.constant 0 : i32
    %c0_i32_1 = arith.constant 0 : i32
    return %c0_i32, %c0_i32_0 : i32, i32
  }
  func.func @transform_6(%arg0: i32) -> (i32, i32) {
    %c0_i32 = arith.constant 0 : i32
    %c0_i32_0 = arith.constant 0 : i32
    %c0_i32_1 = arith.constant 0 : i32
    return %c0_i32, %c0_i32_0 : i32, i32
  }
  func.func @transform_7(%arg0: i32) -> (i32, i32) {
    %c0_i32 = arith.constant 0 : i32
    %c0_i32_0 = arith.constant 0 : i32
    %c0_i32_1 = arith.constant 0 : i32
    return %c0_i32, %c0_i32_0 : i32, i32
  }
  func.func @transform_8(%arg0: i32) -> (i32, i32) {
    %c0_i32 = arith.constant 0 : i32
    %c0_i32_0 = arith.constant 0 : i32
    %c0_i32_1 = arith.constant 0 : i32
    return %c0_i32, %c0_i32_0 : i32, i32
  }
  func.func @transform_9(%arg0: i32) -> (i32, i32) {
    %c0_i32 = arith.constant 0 : i32
    %c0_i32_0 = arith.constant 0 : i32
    %c0_i32_1 = arith.constant 0 : i32
    return %c0_i32, %c0_i32_0 : i32, i32
  }
  func.func @transform_10(%arg0: i32) -> (i32, i32) {
    %c0_i32 = arith.constant 0 : i32
    %c0_i32_0 = arith.constant 0 : i32
    %c0_i32_1 = arith.constant 0 : i32
    return %c0_i32, %c0_i32_0 : i32, i32
  }
  func.func @transform_11(%arg0: i32) -> (i32, i32, i32) {
    %c0_i32 = arith.constant 0 : i32
    %c0_i32_0 = arith.constant 0 : i32
    %c0_i32_1 = arith.constant 0 : i32
    return %arg0, %c0_i32, %c0_i32_0 : i32, i32, i32
  }
  func.func @transform_12(%arg0: i32) -> (i32, i32, i32) {
    %c0_i32 = arith.constant 0 : i32
    %c0_i32_0 = arith.constant 0 : i32
    %c0_i32_1 = arith.constant 0 : i32
    return %arg0, %c0_i32, %c0_i32_0 : i32, i32, i32
  }
}

</mosaic_0001>

<bundles_post_ra>
// kernel: tpu_custom_call.1
= control target key start
LH: loop header
LB: loop body
LE: loop exit
PB: predicated region body
PF: predicated region fallthrough
CT: control target
= control target key end

     0   :  { %s2700_s0 = inlined_call_operand.hbm [shape: bf16[2,8,32], index: 0, kind: input, shape index: {}]   ;;  %s2701_s1 = inlined_call_operand.hbm [shape: bf16[2,8,32], index: 1, kind: input, shape index: {}]   ;;  %s2702_s2 = inlined_call_operand.hbm [shape: bf16[2,8,32], index: 2, kind: input, shape index: {}]   ;;  %s2703_s3 = inlined_call_operand.hbm [shape: bf16[32,32], index: 3, kind: input, shape index: {}]   ;;  %s2704_s4 = inlined_call_operand.vmem [shape: f32[1,32], index: 4, kind: input, shape index: {}]   ;;  %s2705_s5 = inlined_call_operand.vmem [shape: bf16[32,32], index: 5, kind: input, shape index: {}]   ;;  %s2706_s6 = inlined_call_operand.vmem [shape: f32[1,32], index: 6, kind: input, shape index: {}]   ;;  %s2707_s7 = inlined_call_operand.hbm [shape: bf16[32,32], index: 7, kind: input, shape index: {}]   ;;  %s2708_s8 = inlined_call_operand.hbm [shape: f32[1,32], index: 8, kind: input, shape index: {}]   ;;  %s2709_s9 = inlined_call_operand.vmem [shape: bf16[32,32], index: 9, kind: input, shape index: {}]   ;;  %s2710_s10 = inlined_call_operand.vmem [shape: f32[1,32], index: 10, kind: input, shape index: {}]   ;;  %s2711_s11 = inlined_call_operand.hbm [shape: f32[2,8,32], index: 11, kind: output, shape index: {0}]   ;;  %s2712_s12 = inlined_call_operand.hbm [shape: f32[2,8,8], index: 12, kind: output, shape index: {1}]  }
   0x1   :  { %2738 = sst [smem:[#allocation32_spill]] %s2701_s1 }
   0x2   :  { %2739 = sst [smem:[#allocation33_spill]] %s2703_s3 }
   0x3   :  { %2740 = sst [smem:[#allocation34_spill]] %s2704_s4 }
   0x4   :  { %2741 = sst [smem:[#allocation35_spill]] %s2709_s9 }
   0x5   :  { %2742 = sst [smem:[#allocation36_spill]] %s2710_s10 }
   0x6   :  { %2743 = sst [smem:[#allocation37_spill]] %s2711_s11 }
   0x7   :  { %2744 = sst [smem:[#allocation38_spill]] %s2712_s12 }
   0x8   :  { %18 = vsyncpa [#allocation7], 0 }
   0x9   :  { %20 = vsyncpa [#allocation7 + $0x1], 0 }
   0xa   :  { %21 = vsyncpa [#allocation10], 0 }
   0xb   :  { %23 = vsyncpa [#allocation10 + $0x1], 0 }
   0xc   :  { %24 = vsyncpa [#allocation13], 0 }
   0xd   :  { %25 = vsyncpa [#allocation16], 0 }
   0xe   :  { %26 = vsyncpa [#allocation8], 0 }
   0xf   :  { %28 = vsyncpa [#allocation8 + $0x1], 0 }
  0x10   :  { %29 = vsyncpa [#allocation19], 0 }
  0x11   :  { %31 = vsyncpa [#allocation19 + $0x1], 0  ;;  %s2226_s21 = smov 0   ;;  %s2228_s22 = smov 0  }
  0x12   :  { %s2230_s23 = smov 0   ;;  %s2232_s24 = smov 0  }
  0x13 LB: > { %2745 = sst [smem:[#allocation26_spill]] %s2129_s21  ;;  %s2247_s25 = sadd.s32 4294967295, %s2141_s24   ;;  %s2141_s24 = sphi %s2232_s24, %s2788_s24   ;;  %s2137_s23 = sphi %s2230_s23, %s2792_s23   ;;  %s2133_s22 = sphi %s2228_s22, %s2791_s22   ;;  %s2129_s21 = sphi %s2226_s21, %s2790_s21  }
  0x14   : > { %2746 = sst [smem:[#allocation27_spill]] %s2141_s24  ;;  %s1548_s26 = sadd.s32 4294967294, %s2141_s24  }
  0x15   : > { %p57_p0 = scmp.ne.s32.totalorder %s2133_s22, %s2129_s21  ;;  %p2716_p1 = scmp.eq.s32.totalorder %s2247_s25, 0 }
  0x16   : > { %p307_p3 = scmp.eq.s32.totalorder %s1548_s26, 1  ;;  %p1549_p5 = scmp.ge.s32.totalorder %s2141_s24, 1 }
  0x17   : > { %p2256_p4 = por %p2716_p1, %p57_p0  ;;  %p340_p7 = scmp.lt.s32.totalorder %s2141_s24, 3 }
  0x18   : > { %p2261_p6 = por %p307_p3, %p57_p0  ;;  %s2143_s30 = smov [#allocation12]  }
  0x19   : > { %s2747_s27 = scalar_select %p2256_p4, 1, 0 }
  0x1a   : > { %s2748_s28 = scalar_select %p2261_p6, 1, 0 }
  0x1b   : > { %p2266_p8 = pnand %p1549_p5, %p340_p7  ;;  %s352_s13 = sshll.u32 %s2143_s30, 4  ;;  %s2270_s13 = int_to_ptr.vmem [resolvable:$true] %s352_s13 }
  0x1c   : > { %2749 = sst [smem:[#allocation28_spill]] %s2748_s28  ;;  %s2282_s15 = sadd.s32 1, %s2141_s24  }
  0x1d   : > { %s2750_s29 = scalar_select %p2266_p8, 1, 0 }
  0x1e   : > { %p1744_p9 = pneg %p2266_p8  ;;  %2752 = sst [smem:[#allocation29_spill]] %s2282_s15 }
  0x1f   : > { %s44_s16 = sadd.s32 1, %s2137_s23  ;;  %s41_s17 = ssub.s32 %s2141_s24, %s2282_s15 }
  0x20   : > { %p2277_p11 = pnand %p1744_p9, %p2716_p1  ;;  %s2753_s3 = sld [smem:[#allocation33_spill]] }
  0x22   : > { %s2751_s14 = scalar_select %p2277_p11, 1, 0 }
  0x23   : > { %p2295_p13 = pneg %p2277_p11 }
  0x25   : > { %s2754_s28 = scalar_select %p2295_p13, 1, 0 }
  0x26   : > { %s1857_s20 = scalar_lea.hbm %s2753_s3, 256 }
  0x27   : > { %p1858_p12 = scmp.ne.s32.totalorder %s2753_s3, %s1857_s20  ;;  %p1864_p5 = scmp.lt.u32.totalorder %s1857_s20, %s2753_s3 }
  0x29   : > { %p1860_p0 = pnand %p2295_p13, %p1858_p12 }
  0x2b   : > { %p1861_p3 = pneg %p1860_p0 }
  0x2d   : > { %p1866_p7 = pnand %p1864_p5, %p1861_p3 }
  0x2f   : > { %1869 = shalt.err (!%p1866_p7)
}
  0x30   : > { %s1870_s18 = scalar_lea.vmem %s2270_s13, 256  ;;  %p1878_p2 = scmp.lt.s32.totalorder %s2270_s13, %s2270_s13 }
  0x31   : > { %p1871_p9 = scmp.ne.s32.totalorder %s2270_s13, %s1870_s18  ;;  %p1879_p6 = scmp.lt.s32.totalorder %s1870_s18, %s1870_s18 }
  0x33   : > { %p1873_p10 = pnand %p1871_p9, %p2295_p13  ;;  %p1880_p12 = por %p1879_p6, %p1878_p2 }
  0x35   : > { %p1874_p1 = pneg %p1873_p10 }
  0x37   : > { %p1881_p0 = pnand %p1880_p12, %p1874_p1 }
  0x39   : > { %1884 = shalt.err (!%p1881_p0)
}
  0x3a   : > { %s2719_s19 = smov 64   ;;  %s2720_s11 = smov 4  }
  0x3b   : > { %1747 = dma.hbm_to_vmem [thread:$0]  (!%p2277_p11), %s2753_s3, 256, %s2270_s13, [#allocation13], %s2719_s19, %s2719_s19, %s2720_s11  }
  0x3c   : > { %p42_p1 = scmp.eq.s32.totalorder %s41_s17, 0  ;;  %p51_p2 = scmp.ne.s32.totalorder %s2137_s23, %s2133_s22 }
  0x3d   : > { %p52_p6 = scmp.eq.s32.totalorder %s2141_s24, 0  ;;  %p1774_p10 = scmp.lt.s32.totalorder %s2141_s24, 2 }
  0x3e   : > { %s2324_s26 = scalar_select %p42_p1, %s2137_s23, %s44_s16  }
  0x3f   : > { %p53_p3 = por %p52_p6, %p51_p2  ;;  %p2756_p5 = scmp.eq.s32.totalorder %s2247_s25, 1 }
  0x40   : > { %2755 = sst [smem:[#allocation30_spill]] %s2324_s26  ;;  %s2721_s18 = sand.u32 1, %s2137_s23  }
  0x41   : > { %p2328_p7 = por %p2756_p5, %p51_p2  ;;  %s2334_s15 = sshll.u32 %s2141_s24, 6 }
  0x42   : > { %s2338_s10 = sshll.u32 %s2721_s18, 2  ;;  %p2340_p9 = pnand %p1774_p10, %p53_p3 }
  0x43   : > { %s2757_s30 = scalar_select %p2328_p7, 1, 0 }
  0x44   : > { %s2759_s13 = scalar_select %p2340_p9, 1, 0 }
  0x45   : > { %2758 = sst [smem:[#allocation31_spill]] %s2757_s30  ;;  %s423_s16 = sand.u32 1, %s2141_s24  }
  0x46   : > { %s2760_s1 = sld [smem:[#allocation32_spill]]  ;;  %s427_s19 = scalar_lea.vmem [#allocation9], %s2338_s10 }
  0x47   : > { %s434_s11 = sshll.u32 %s427_s19, 4  ;;  %s2354_s18 = scalar_lea.sflag [#allocation10], %s423_s16  ;;  %s2352_s11 = int_to_ptr.vmem [resolvable:$true] %s434_s11 }
  0x48   : > { %p2360_p0 = pneg %p2340_p9 }
  0x4a   : > { %s2761_s26 = scalar_select %p2360_p0, 1, 0 }
  0x4c   : > { %s2349_s20 = scalar_lea.hbm %s2760_s1, %s2334_s15  ;;  %s1890_s24 = scalar_lea.hbm %s2760_s1, 128 }
  0x4d   : > { %s1885_s3 = scalar_lea.hbm %s2349_s20, 64  ;;  %p1891_p6 = scmp.lt.u32.totalorder %s2349_s20, %s2760_s1 }
  0x4e   : > { %p1886_p12 = scmp.ne.s32.totalorder %s2349_s20, %s1885_s3  ;;  %p1892_p10 = scmp.lt.u32.totalorder %s1890_s24, %s1885_s3 }
  0x4f   : > { %p1894_p5 = scmp.lt.u32.totalorder %s1885_s3, %s2349_s20 }
  0x50   : > { %p1888_p1 = pnand %p2360_p0, %p1886_p12  ;;  %p1893_p3 = por %p1892_p10, %p1891_p6 }
  0x52   : > { %p1889_p2 = pneg %p1888_p1  ;;  %p1895_p7 = por %p1894_p5, %p1893_p3 }
  0x54   : > { %p1896_p4 = pnand %p1895_p7, %p1889_p2 }
  0x56   : > { %1899 = shalt.err (!%p1896_p4)
}
  0x57   : > { %s1900_s16 = scalar_lea.vmem %s2352_s11, 64  ;;  %s2146_s17 = smov [#allocation9]  }
  0x58   : > { %p1901_p12 = scmp.ne.s32.totalorder %s2352_s11, %s1900_s16  ;;  %s1905_s21 = sshll.u32 %s2146_s17, 4  ;;  %s1906_s21 = int_to_ptr.vmem [resolvable:$false] %s1905_s21 }
  0x59   : > { %s1907_s12 = scalar_lea.vmem %s1906_s21, 128  ;;  %p1908_p11 = scmp.lt.s32.totalorder %s2352_s11, %s1906_s21 }
  0x5a   : > { %p1903_p1 = pnand %p1901_p12, %p2360_p0  ;;  %p1909_p13 = scmp.lt.s32.totalorder %s1907_s12, %s1900_s16 }
  0x5c   : > { %p1904_p8 = pneg %p1903_p1  ;;  %p1910_p6 = por %p1909_p13, %p1908_p11 }
  0x5e   : > { %p1911_p10 = pnand %p1910_p6, %p1904_p8 }
  0x60   : > { %1914 = shalt.err (!%p1911_p10)
}
  0x61   : > { %1760 = dma.hbm_to_vmem [thread:$0]  (!%p2340_p9), %s2349_s20, 64, %s2352_s11, %s2354_s18  }
  0x62   : > { %s2147_s3 = smov [#allocation14]   ;;  %s2148_s19 = smov [#allocation15]  }
  0x63   : > { %s374_s24 = sshll.u32 %s2147_s3, 4  ;;  %s388_s1 = sshll.u32 %s2148_s19, 4  ;;  %s375_s24 = int_to_ptr.vmem [resolvable:$true] %s374_s24  ;;  %s389_s1 = int_to_ptr.vmem [resolvable:$true] %s388_s1 }
  0x64   : > { %s1915_s21 = scalar_lea.hbm %s2707_s7, 256  ;;  %p2762_p8 = scmp.ne.s32.totalorder %s2754_s28, 0 }
  0x65   : > { %p1916_p4 = scmp.ne.s32.totalorder %s2707_s7, %s1915_s21  ;;  %p1922_p7 = scmp.lt.u32.totalorder %s1915_s21, %s2707_s7 }
  0x67   : > { %p1918_p11 = pnand %p1916_p4, %p2762_p8 }
  0x69   : > { %p1919_p13 = pneg %p1918_p11 }
  0x6b   : > { %p1924_p2 = pnand %p1922_p7, %p1919_p13 }
  0x6d   : > { %1927 = shalt.err (!%p1924_p2)
}
  0x6e   : > { %s1928_s11 = scalar_lea.vmem %s375_s24, 256  ;;  %p1936_p1 = scmp.lt.s32.totalorder %s375_s24, %s375_s24 }
  0x6f   : > { %p1929_p3 = scmp.ne.s32.totalorder %s375_s24, %s1928_s11  ;;  %p1937_p6 = scmp.lt.s32.totalorder %s1928_s11, %s1928_s11 }
  0x71   : > { %p1931_p5 = pnand %p1929_p3, %p2762_p8  ;;  %p1938_p10 = por %p1937_p6, %p1936_p1 }
  0x73   : > { %p1932_p12 = pneg %p1931_p5 }
  0x75   : > { %p1939_p9 = pnand %p1938_p10, %p1932_p12 }
  0x77   : > { %1942 = shalt.err (!%p1939_p9)
}
  0x78   : > { %p2763_p4 = scmp.ne.s32.totalorder %s2751_s14, 0  ;;  %s2764_s30 = smov 4  }
  0x79   : > { %s2765_s20 = smov 64   ;;  %s1943_s17 = scalar_lea.hbm %s2708_s8, 16 }
  0x7a   : > { %1750 = dma.hbm_to_vmem [thread:$0]  (!%p2763_p4), %s2707_s7, 256, %s375_s24, [#allocation13], %s2765_s20, %s2765_s20, %s2764_s30  }
  0x7b   : > { %p1944_p11 = scmp.ne.s32.totalorder %s2708_s8, %s1943_s17  ;;  %p1950_p7 = scmp.lt.u32.totalorder %s1943_s17, %s2708_s8 }
  0x7d   : > { %p1946_p9 = pnand %p1944_p11, %p2762_p8 }
  0x7f   : > { %p1947_p13 = pneg %p1946_p9 }
  0x81   : > { %p1952_p2 = pnand %p1950_p7, %p1947_p13 }
  0x83   : > { %1955 = shalt.err (!%p1952_p2)
}
  0x84   : > { %s1956_s4 = scalar_lea.vmem %s389_s1, 16  ;;  %s1963_s24 = scalar_lea.vmem %s389_s1, 32 }
  0x85   : > { %p1957_p3 = scmp.ne.s32.totalorder %s389_s1, %s1956_s4  ;;  %p1964_p1 = scmp.lt.s32.totalorder %s389_s1, %s389_s1 }
  0x86   : > { %p1965_p6 = scmp.lt.s32.totalorder %s1963_s24, %s1956_s4 }
  0x87   : > { %p1959_p5 = pnand %p1957_p3, %p2762_p8 }
  0x88   : > { %p1966_p10 = por %p1965_p6, %p1964_p1 }
  0x89   : > { %p1960_p12 = pneg %p1959_p5 }
  0x8b   : > { %p1967_p0 = pnand %p1966_p10, %p1960_p12 }
  0x8d   : > { %1970 = shalt.err (!%p1967_p0)
}
  0x8e   : > { %1753 = dma.hbm_to_vmem [thread:$0]  (!%p2763_p4), %s2708_s8, 16, %s389_s1, [#allocation16]  }
  0x8f   : > { %s2427_s3 = scalar_lea.hbm %s2700_s0, %s2334_s15  ;;  %s409_s19 = scalar_lea.vmem [#allocation6], %s2338_s10 }
  0x90   : > { %s416_s14 = sshll.u32 %s409_s19, 4  ;;  %s2436_s16 = scalar_lea.hbm %s2702_s2, %s2334_s15  ;;  %s2430_s14 = int_to_ptr.vmem [resolvable:$true] %s416_s14 }
  0x91   : > { %s2766_s12 = sand.u32 1, %s2137_s23   ;;  %s1971_s11 = scalar_lea.hbm %s2427_s3, 64 }
  0x92   : > { %s406_s1 = scalar_lea.sflag [#allocation7], %s2766_s12  ;;  %p1972_p0 = scmp.ne.s32.totalorder %s2427_s3, %s1971_s11 }
  0x93   : > { %p2767_p8 = scmp.ne.s32.totalorder %s2761_s26, 0  ;;  %s1976_s30 = scalar_lea.hbm %s2700_s0, 128 }
  0x94   : > { %p1977_p9 = scmp.lt.u32.totalorder %s2427_s3, %s2700_s0  ;;  %p1978_p13 = scmp.lt.u32.totalorder %s1976_s30, %s1971_s11 }
  0x95   : > { %p1974_p4 = pnand %p1972_p0, %p2767_p8  ;;  %p1980_p2 = scmp.lt.u32.totalorder %s1971_s11, %s2427_s3 }
  0x96   : > { %p1979_p7 = por %p1978_p13, %p1977_p9 }
  0x97   : > { %p1975_p11 = pneg %p1974_p4 }
  0x98   : > { %p1981_p3 = por %p1980_p2, %p1979_p7 }
  0x9a   : > { %p1982_p5 = pnand %p1981_p3, %p1975_p11 }
  0x9c   : > { %1985 = shalt.err (!%p1982_p5)
}
  0x9d   : > { %s1986_s15 = scalar_lea.vmem %s2430_s14, 64  ;;  %s2149_s9 = smov [#allocation6]  }
  0x9e   : > { %p1987_p12 = scmp.ne.s32.totalorder %s2430_s14, %s1986_s15  ;;  %s1991_s19 = sshll.u32 %s2149_s9, 4  ;;  %s1992_s19 = int_to_ptr.vmem [resolvable:$false] %s1991_s19 }
  0x9f   : > { %s1993_s17 = scalar_lea.vmem %s1992_s19, 128  ;;  %p1994_p10 = scmp.lt.s32.totalorder %s2430_s14, %s1992_s19 }
  0xa0   : > { %p1989_p1 = pnand %p1987_p12, %p2767_p8  ;;  %p1995_p0 = scmp.lt.s32.totalorder %s1993_s17, %s1986_s15 }
  0xa2   : > { %p1990_p6 = pneg %p1989_p1  ;;  %p1996_p4 = por %p1995_p0, %p1994_p10 }
  0xa4   : > { %p1997_p9 = pnand %p1996_p4, %p1990_p6 }
  0xa6   : > { %2000 = shalt.err (!%p1997_p9)
}
  0xa7   : > { %p2768_p11 = scmp.ne.s32.totalorder %s2759_s13, 0  ;;  %s445_s21 = scalar_lea.vmem [#allocation11], %s2338_s10 }
  0xa8   : > { %s452_s12 = sshll.u32 %s445_s21, 4  ;;  %s2001_s11 = scalar_lea.hbm %s2436_s16, 64  ;;  %s453_s12 = int_to_ptr.vmem [resolvable:$true] %s452_s12 }
  0xa9   : > { %1757 = dma.hbm_to_vmem [thread:$0]  (!%p2768_p11), %s2427_s3, 64, %s2430_s14, %s406_s1  }
  0xaa   : > { %p2002_p13 = scmp.ne.s32.totalorder %s2436_s16, %s2001_s11  ;;  %s2006_s30 = scalar_lea.hbm %s2702_s2, 128 }
  0xab   : > { %p2007_p3 = scmp.lt.u32.totalorder %s2436_s16, %s2702_s2  ;;  %p2008_p5 = scmp.lt.u32.totalorder %s2006_s30, %s2001_s11 }
  0xac   : > { %p2004_p7 = pnand %p2002_p13, %p2767_p8  ;;  %p2010_p1 = scmp.lt.u32.totalorder %s2001_s11, %s2436_s16 }
  0xad   : > { %p2009_p12 = por %p2008_p5, %p2007_p3 }
  0xae   : > { %p2005_p2 = pneg %p2004_p7 }
  0xaf   : > { %p2011_p6 = por %p2010_p1, %p2009_p12 }
  0xb1   : > { %p2012_p10 = pnand %p2011_p6, %p2005_p2 }
  0xb3   : > { %2015 = shalt.err (!%p2012_p10)
}
  0xb4   : > { %s2016_s10 = scalar_lea.vmem %s453_s12, 64  ;;  %s2150_s3 = smov [#allocation11]  }
  0xb5   : > { %p2017_p0 = scmp.ne.s32.totalorder %s453_s12, %s2016_s10  ;;  %s2021_s14 = sshll.u32 %s2150_s3, 4  ;;  %s2022_s14 = int_to_ptr.vmem [resolvable:$false] %s2021_s14 }
  0xb6   : > { %s2023_s1 = scalar_lea.vmem %s2022_s14, 128  ;;  %p2024_p13 = scmp.lt.s32.totalorder %s453_s12, %s2022_s14 }
  0xb7   : > { %p2019_p4 = pnand %p2017_p0, %p2767_p8  ;;  %p2025_p7 = scmp.lt.s32.totalorder %s2023_s1, %s2016_s10 }
  0xb9   : > { %p2020_p9 = pneg %p2019_p4  ;;  %p2026_p11 = por %p2025_p7, %p2024_p13 }
  0xbb   : > { %p2027_p3 = pnand %p2026_p11, %p2020_p9 }
  0xbd   : > { %2030 = shalt.err (!%p2027_p3)
}
  0xbe   : > { %p2769_p5 = scmp.ne.s32.totalorder %s2759_s13, 0  ;;  %p2770_p2 = scmp.ne.s32.totalorder %s2750_s29, 0 }
  0xbf   : > { %s2483_s26 = sand.u32 (!%p2770_p2), 1, %s2133_s22   ;;  %p2771_p8 = scmp.ne.s32.totalorder (!%p2770_p2), %s2747_s27, 0 }
  0xc0   : > { %1763 = dma.hbm_to_vmem [thread:$0]  (!%p2769_p5), %s2436_s16, 64, %s453_s12, %s2354_s18  }
  0xc1   : > { %461 = sbr.rel (%p2770_p2) target bundleno = 1679 (0x68f), region = 64  ;;  %s2486_s15 = sshll.u32 (!%p2770_p2), %s2483_s26, 2 }
  0xc2   : > { %s464_s9 = scalar_lea.sflag (!%p2770_p2), [#allocation7], %s2483_s26  ;;  %s467_s19 = scalar_lea.vmem (!%p2770_p2), [#allocation6], %s2486_s15 }
  0xc8   : > { %2104 = dma.done.wait (%p2771_p8), %s464_s9, 64  }
  0xc9   : > { %2106 = vsyncadd (%p2771_p8), %s464_s9, 4294967232  ;;  %s472_s29 = sand.u32 1, %s2247_s25   ;;  %s476_s13 = scalar_lea.vmem [#allocation9], %s2486_s15 }
  0xca   : > { %s473_s18 = scalar_lea.sflag [#allocation10], %s472_s29 }
  0xcb   : > { %2108 = dma.done.wait (%p2771_p8), %s473_s18, 128  }
  0xcc   : > { %2110 = vsyncadd (%p2771_p8), %s473_s18, 4294967168  ;;  %s485_s16 = scalar_lea.vmem [#allocation11], %s2486_s15  ;;  %p2772_p11 = scmp.eq.s32.totalorder %s2247_s25, 0 }
  0xce   : > { %2112 = dma.done.wait (%p2772_p11), [#allocation13], 512   ;;  %p2773_p12 = pmov %p2772_p11 }
  0xcf   : > { %p2774_p1 = pmov %p2772_p11 }
  0xd0   : > { %2114 = vsyncadd (%p2773_p12), [#allocation13], 4294966784 }
  0xd1   : > { %2116 = dma.done.wait (%p2774_p1), [#allocation16], 16   ;;  %p2775_p6 = pmov %p2774_p1 }
  0xd2   : > { %v2151_v0 = vmov 0.0   ;;  %vm2152_vm0 = vmmov 0   ;;  %v1824_v1 = vld [vmem:[%s2705_s5] sm:$0xff]   ;;  %v1825_v2 = vld [vmem:[#allocation12] sm:$0xff]   ;;  %v555_v4 = vld [vmem:[%s476_s13] sm:$0xf] }
  0xd3   : > { %2118 = vsyncadd (%p2775_p6), [#allocation16], 4294967280  ;;  %1650 = vmatprep.subr.bf16.mxu1 %v2151_v0  ;;  %1642 = vmatprep.subr.bf16.mxu0 %v2151_v0  ;;  %v1826_v3 = vld [vmem:[%s2705_s5 + $0x8] sm:$0xff]   ;;  %vm580_vm1 = vcmask 261120   ;;  %v1827_v5 = vld [vmem:[#allocation12 + $0x8] sm:$0xff]   ;;  %s2776_s20 = sld [smem:[#allocation34_spill]] }
  0xd4   : > { %1654 = vmatprep.mubr.msk.bf16.mxu1 %vm2152_vm0, %v2151_v0  ;;  %1646 = vmatprep.mubr.msk.bf16.mxu0 %vm2152_vm0, %v2151_v0  ;;  %v554_v6 = vld [vmem:[%s467_s19] sm:$0xf]  ;;  %v1573_v7 = vld [vmem:[%s2706_s6] ss:$0 sm:$0xff]  ;;  %vm625_vm2 = vcmask 257024   ;;  %vm771_vm3 = vcmask 64512  }
  0xd5   : > { %1651 = vmatpush3.bf16.msra.mxu1 %v1824_v1  ;;  %1643 = vmatpush3.bf16.msra.mxu0 %v1825_v2  ;;  %s2153_s28 = smov 112   ;;  %s2154_s10 = smov 120   ;;  %v1834_v30 = vld [vmem:[#allocation14] sm:$0xff]   ;;  %v1835_v31 = vld [vmem:[#allocation14 + $0x8] sm:$0xff]   ;;  %v1577_v47 = vld [vmem:[#allocation15] ss:$0 sm:$0xff] }
  0xd6   : > { %1652 = vmatprep.subr.bf16.mxu1 %v2151_v0  ;;  %1644 = vmatprep.subr.bf16.mxu0 %v2151_v0  ;;  %s2155_s3 = smov 104   ;;  %v556_v32 = vld [vmem:[%s485_s16] sm:$0xf]  ;;  %vm834_vm4 = vcmask 1043456   ;;  %s1567_s14 = sshll.u32 %s2483_s26, 3  ;;  %vm879_vm5 = vcmask 60416  }
  0xd7   : > { %s2606_s1 = scalar_lea.vmem [#allocation18], %s1567_s14  ;;  %s2156_s15 = smov 8   ;;  %vm1011_vm6 = vcmask 126016   ;;  %vm1143_vm7 = vcmask 191616   ;;  %vm1275_vm8 = vcmask 257216  }
  0xd8   : > { %s2777_s29 = sld [smem:[#allocation35_spill]]  ;;  %s2157_s16 = smov 16  }
  0xd9   : > { %1653 = vmatpush3.bf16.msra.mxu1 %v1826_v3  ;;  %1645 = vmatpush3.bf16.msra.mxu0 %v1827_v5  ;;  %v1569_v8 = vld [vmem:[%s2776_s20] ss:$0 sm:$0xff]  ;;  %s2158_s27 = smov 24   ;;  %s2778_s17 = sld [smem:[#allocation31_spill]] }
  0xda   : > { %1666 = vmatprep.subr.bf16.mxu1 %v2151_v0  ;;  %1658 = vmatprep.subr.bf16.mxu0 %v2151_v0  ;;  %s1607_s21 = sshll.u32 %s2247_s25, 7  ;;  %s2779_s4 = sld [smem:[#allocation38_spill]] }
  0xdb   : > { %s1374_s30 = sshll.u32 %s2606_s1, 4  ;;  %s1348_s20 = scalar_lea.sflag [#allocation19], %s2483_s26  ;;  %s1375_s30 = int_to_ptr.vmem [resolvable:$true] %s1374_s30 }
  0xdc   : > { %1655 = vmatmul.mubr.msk.bf16.vlgmr.msra.gmra.mrb[0].mxu1 %vm580_vm1, %v555_v4  ;;  %1647 = vmatmul.mubr.msk.bf16.vlgmr.msra.gmra.mrb[0].mxu0 %vm580_vm1, %v554_v6 }
  0xdd   : > { %1668 = vmatprep.mubr.msk.bf16.mxu1 %vm2152_vm0, %v2151_v0  ;;  %1662 = vmatprep.mubr.msk.bf16.mxu0 %vm2152_vm0, %v2151_v0 }
  0xde   : > { %1659 = vmatpush3.bf16.msra.mxu0 %v1834_v30 }
  0xdf   : > { %1660 = vmatprep.subr.bf16.mxu0 %v2151_v0  ;;  %p2780_p0 = scmp.ne.s32.totalorder %s2778_s17, 0 }
  0xe0   : > { %s2624_s24 = scalar_lea.hbm %s2779_s4, %s1607_s21 }
  0xe2   : > { %1661 = vmatpush3.bf16.msra.mxu0 %v1835_v31 }
  0xe3   : > { %1672 = vmatprep.subr.bf16.mxu0 %v2151_v0 }
  0xe5   : > { %1663 = vmatmul.mubr.msk.bf16.vlgmr.msra.gmra.mrb[4].mxu0 %vm580_vm1, %v556_v32 }
  0xe6   : > { %1674 = vmatprep.mubr.msk.bf16.mxu0 %vm2152_vm0, %v2151_v0 }
 0x1af   : > { %v687_v9 = vpop.f32.mrb[0].mxu1  ;;  %v618_v12 = vpop.f32.mrb[0].mxu0 }
 0x1b0   : > { %v688_v10 = vadd.f32 %v1573_v7, %v687_v9  ;;  %v1656_v11 = vpop.f32.mrb[1].mxu1  ;;  %v619_v14 = vadd.f32 %v1569_v8, %v618_v12  ;;  %v1648_v15 = vpop.f32.mrb[1].mxu0 }
 0x1b1   : > { %v690_v13 = vpop.f32.mrb[2].mxu1  ;;  %v621_v18 = vpop.f32.mrb[2].mxu0 }
 0x1b2   : > { %v693_v16 = vpack.c.bf16 %v688_v10, %v688_v10  ;;  %v1657_v17 = vpop.f32.mrb[3].mxu1  ;;  %v624_v19 = vpack.c.bf16 %v619_v14, %v619_v14  ;;  %v1649_v20 = vpop.f32.mrb[3].mxu0 }
 0x1b4   : > { %694 = vst.msk [vmem:[#allocation3] sm:$0xf] %vm625_vm2, %v693_v16  ;;  %626 = vst.msk [vmem:[#allocation2] sm:$0xf] %vm625_vm2, %v624_v19 }
 0x1b8   : > { %v755_v48 = vpop.f32.mrb[4].mxu0 }
 0x1b9   : > { %v756_v49 = vadd.f32 %v1577_v47, %v755_v48  ;;  %v1664_v50 = vpop.f32.mrb[5].mxu0 }
 0x1ba   : > { %v758_v51 = vpop.f32.mrb[6].mxu0 }
 0x1bb   : > { %v769_v21 = vld [vmem:[#allocation3] sm:$0xf]  ;;  %v1830_v25 = vld [vmem:[#allocation2] ss:$0 sps:$4 sm:$0xff]   ;;  %v761_v52 = vpack.c.bf16 %v756_v49, %v756_v49  ;;  %v1665_v53 = vpop.f32.mrb[7].mxu0 }
 0x1bc   : > { %v1828_v22 = vld [vmem:[#allocation3] ss:$0 sps:$4 sm:$0xff]   ;;  %v776_v23 = vsel %vm771_vm3, %v769_v21, 0  ;;  %v1831_v26 = vld [vmem:[#allocation2] ss:$0 sps:$4 sm:$0xff]  }
 0x1bd   : > { %v1829_v24 = vld [vmem:[#allocation3] ss:$0 sps:$4 sm:$0xff]   ;;  %1667 = vmatpush3.bf16.xpose.msra.mxu1 %v776_v23  ;;  %1024 = vrot.lane.b32.xlu1 %v1828_v22, %s2153_s28  ;;  %v768_v27 = vld [vmem:[#allocation2] sm:$0xf]  ;;  %762 = vst.msk [vmem:[#allocation4] sm:$0xf] %vm625_vm2, %v761_v52 }
 0x1be   : > { %892 = vrot.lane.b32.xlu0 %v1829_v24, %s2154_s10  ;;  %1678 = vmatprep.subr.bf16.mxu1 %v2151_v0  ;;  %v1832_v28 = vld [vmem:[#allocation2] ss:$0 sps:$4 sm:$0xff]   ;;  %v1833_v29 = vld [vmem:[#allocation3] ss:$0 sps:$4 sm:$0xff]  }
 0x1c1   : > { %1019 = vrot.lane.b32.xlu1 %v1830_v25, %s2153_s28 }
 0x1c2   : > { %887 = vrot.lane.b32.xlu0 %v1831_v26, %s2154_s10 }
 0x1c4   : > { %1669 = vmatmul.mubr.msk.bf16.vlgmr.msra.gmra.mrb[4].mxu1 %vm771_vm3, %v768_v27  ;;  %v770_v54 = vld [vmem:[#allocation4] sm:$0xf] }
 0x1c5   : > { %1151 = vrot.lane.b32.xlu1 %v1832_v28, %s2155_s3  ;;  %1680 = vmatprep.mubr.msk.bf16.mxu1 %vm2152_vm0, %v2151_v0  ;;  %v836_v55 = vsel %vm834_vm4, %v770_v54, 0  ;;  %v1836_v13 = vld [vmem:[#allocation4] ss:$0 sps:$4 sm:$0xff]  }
 0x1c6   : > { %1156 = vrot.lane.b32.xlu0 %v1833_v29, %s2155_s3  ;;  %1673 = vmatpush3.bf16.msra.mxu0 %v836_v55  ;;  %v1837_v29 = vld [vmem:[#allocation4] ss:$0 sps:$4 sm:$0xff]  }
 0x1c7   : > { %1684 = vmatprep.subr.bf16.mxu0 %v2151_v0 }
 0x22f   : > { %v1025_v35 = vpop.permute.xlu1 %1024 }
 0x230   : > { %v893_v33 = vpop.permute.xlu0 %892  ;;  %v1030_v37 = vsel %vm771_vm3, %v1025_v35, 0 }
 0x231   : > { %v898_v34 = vsel %vm771_vm3, %v893_v33, 0 }
 0x232   : > { %1679 = vmatpush3.bf16.xpose.msra.mxu1 %v898_v34  ;;  %v1838_v34 = vld [vmem:[#allocation4] ss:$0 sps:$4 sm:$0xff]  }
 0x233   : > { %1690 = vmatprep.subr.bf16.mxu1 %v2151_v0  ;;  %v1020_v39 = vpop.permute.xlu1 %1019 }
 0x234   : > { %v888_v36 = vpop.permute.xlu0 %887 }
 0x237   : > { %v1152_v41 = vpop.permute.xlu1 %1151 }
 0x238   : > { %v1157_v38 = vpop.permute.xlu0 %1156 }
 0x239   : > { %1681 = vmatmul.mubr.msk.bf16.vlgmr.msra.gmra.mrb[8].mxu1 %vm771_vm3, %v888_v36  ;;  %v1162_v40 = vsel %vm771_vm3, %v1157_v38, 0 }
 0x23a   : > { %1691 = vmatpush3.bf16.xpose.msra.mxu1 %v1030_v37  ;;  %1692 = vmatprep.mubr.msk.bf16.mxu1 %vm2152_vm0, %v2151_v0 }
 0x23b   : > { %1702 = vmatprep.subr.bf16.mxu1 %v2151_v0 }
 0x241   : > { %1693 = vmatmul.mubr.msk.bf16.vlgmr.msra.gmra.mrb[12].mxu1 %vm771_vm3, %v1020_v39 }
 0x242   : > { %1703 = vmatpush3.bf16.xpose.msra.mxu1 %v1162_v40  ;;  %1704 = vmatprep.mubr.msk.bf16.mxu1 %vm2152_vm0, %v2151_v0 }
 0x243   : > { %1714 = vmatprep.subr.bf16.mxu1 %v2151_v0 }
 0x249   : > { %1705 = vmatmul.mubr.msk.bf16.vlgmr.msra.gmra.mrb[16].mxu1 %vm771_vm3, %v1152_v41 }
 0x24a   : > { %1718 = vmatprep.mubr.msk.bf16.mxu1 %vm2152_vm0, %v2151_v0 }
 0x297   : > { %v812_v42 = vpop.f32.mrb[4].mxu1 }
 0x298   : > { %v1670_v43 = vpop.f32.mrb[5].mxu1  ;;  %v818_v44 = vsel %vm771_vm3, %v812_v42, -inf }
 0x299   : > { %819 = vmax.xlane.f32.xlu0 %v818_v44  ;;  %v815_v45 = vpop.f32.mrb[6].mxu1 }
 0x29a   : > { %v1671_v46 = vpop.f32.mrb[7].mxu1 }
 0x30c   : > { %v934_v56 = vpop.f32.mrb[8].mxu1 }
 0x30d   : > { %v1682_v57 = vpop.f32.mrb[9].mxu1  ;;  %v940_v58 = vsel %vm771_vm3, %v934_v56, -inf }
 0x30e   : > { %941 = vmax.xlane.f32.xlu1 %v940_v58  ;;  %v937_v59 = vpop.f32.mrb[10].mxu1 }
 0x30f   : > { %v1683_v60 = vpop.f32.mrb[11].mxu1 }
 0x314   : > { %v1066_v61 = vpop.f32.mrb[12].mxu1 }
 0x315   : > { %v1694_v62 = vpop.f32.mrb[13].mxu1  ;;  %v1072_v63 = vsel %vm771_vm3, %v1066_v61, -inf }
 0x316   : > { %1073 = vmax.xlane.f32.xlu0 %v1072_v63  ;;  %v1069_v1 = vpop.f32.mrb[14].mxu1 }
 0x317   : > { %v1695_v2 = vpop.f32.mrb[15].mxu1 }
 0x31c   : > { %v1198_v3 = vpop.f32.mrb[16].mxu1 }
 0x31d   : > { %v1706_v4 = vpop.f32.mrb[17].mxu1  ;;  %v1204_v5 = vsel %vm771_vm3, %v1198_v3, -inf }
 0x31e   : > { %1205 = vmax.xlane.f32.xlu0 %v1204_v5  ;;  %v1201_v6 = vpop.f32.mrb[18].mxu1  ;;  %v1839_v4 = vld [vmem:[%s2777_s29] sm:$0xff]  }
 0x31f   : > { %v1707_v7 = vpop.f32.mrb[19].mxu1  ;;  %1715 = vmatpush3.bf16.msra.mxu1 %v1839_v4  ;;  %v1840_v6 = vld [vmem:[%s2777_s29 + $0x8] sm:$0xff]  }
 0x320   : > { %1716 = vmatprep.subr.bf16.mxu1 %v2151_v0 }
 0x323   : > { %1717 = vmatpush3.bf16.msra.mxu1 %v1840_v6 }
 0x326   : > { %v820_v8 = vpop.xlane.xlu0 %819 }
 0x327   : > { %v821_v9 = vsub.f32 %v812_v42, %v820_v8 }
 0x329   : > { %v822_v10 = vmul.f32 1.442695, %v821_v9 }
 0x32b   : > { %1841 = vpow2.f32 %v822_v10 }
 0x335   : > { %v1842_v11 = vpop.eup %1841 }
 0x336   : > { %v824_v12 = vsel %vm771_vm3, %v1842_v11, 0.0 }
 0x337   : > { %825 = vadd.xlane.f32.xlu1 %v824_v12 }
 0x348   : > { %956 = vrot.lane.b32.xlu1 %v1836_v13, %s2154_s10  ;;  %s2159_s10 = smov [#allocation18]  }
 0x39b   : > { %v942_v14 = vpop.xlane.xlu1 %941 }
 0x39c   : > { %v943_v15 = vsub.f32 %v934_v56, %v942_v14 }
 0x39e   : > { %v944_v16 = vmul.f32 1.442695, %v943_v15 }
 0x3a0   : > { %1843 = vpow2.f32 %v944_v16 }
 0x3a3   : > { %v1074_v17 = vpop.xlane.xlu0 %1073 }
 0x3a4   : > { %v1075_v18 = vsub.f32 %v1066_v61, %v1074_v17 }
 0x3a6   : > { %v1076_v19 = vmul.f32 1.442695, %v1075_v18 }
 0x3a8   : > { %1845 = vpow2.f32 %v1076_v19 }
 0x3aa   : > { %v1844_v20 = vpop.eup %1843 }
 0x3ab   : > { %v1206_v21 = vpop.xlane.xlu0 %1205  ;;  %v946_v22 = vsel %vm771_vm3, %v1844_v20, 0.0 }
 0x3ac   : > { %v1207_v23 = vsub.f32 %v1198_v3, %v1206_v21  ;;  %947 = vadd.xlane.f32.xlu0 %v946_v22 }
 0x3ae   : > { %v1208_v24 = vmul.f32 1.442695, %v1207_v23 }
 0x3b0   : > { %1847 = vpow2.f32 %v1208_v24 }
 0x3b2   : > { %v1846_v25 = vpop.eup %1845 }
 0x3b3   : > { %v1078_v26 = vsel %vm771_vm3, %v1846_v25, 0.0 }
 0x3b4   : > { %1079 = vadd.xlane.f32.xlu1 %v1078_v26 }
 0x3ba   : > { %v1848_v27 = vpop.eup %1847 }
 0x3bb   : > { %v1210_v28 = vsel %vm771_vm3, %v1848_v27, 0.0 }
 0x3bc   : > { %1211 = vadd.xlane.f32.xlu0 %v1210_v28 }
 0x3c4   : > { %v826_v30 = vpop.xlane.xlu1 %825 }
 0x3c5   : > { %1849 = vrcp.f32 %v826_v30  ;;  %1220 = vrot.lane.b32.xlu1 %v1837_v29, %s2155_s3  ;;  %s2035_s3 = sshll.u32 %s2159_s10, 4  ;;  %s2036_s3 = int_to_ptr.vmem [resolvable:$false] %s2035_s3 }
 0x3c6   : > { %p2038_p13 = scmp.lt.s32.totalorder %s1375_s30, %s2036_s3 }
 0x3c8   : > { %v957_v32 = vpop.permute.xlu1 %956 }
 0x3c9   : > { %v962_v36 = vsel %vm834_vm4, %v957_v32, 0 }
 0x3cf   : > { %v1850_v31 = vpop.eup %1849 }
 0x3d0   : > { %v828_v33 = vmul.f32 %v1850_v31, %v1842_v11 }
 0x3d2   : > { %1088 = vrot.lane.b32.xlu0 %v1838_v34, %s2153_s28  ;;  %v830_v35 = vpack.c.bf16 %v828_v33, %v828_v33  ;;  %s2031_s28 = scalar_lea.vmem %s1375_s30, 128 }
 0x3d3   : > { %p2032_p10 = scmp.ne.s32.totalorder %s1375_s30, %s2031_s28 }
 0x3d4   : > { %1675 = vmatmul.mubr.msk.bf16.vlgmr.msra.gmra.mrb[8].mxu0 %vm771_vm3, %v830_v35 }
 0x3d5   : > { %1685 = vmatpush3.bf16.msra.mxu0 %v962_v36  ;;  %1686 = vmatprep.mubr.msk.bf16.mxu0 %vm2152_vm0, %v2151_v0  ;;  %p2033_p4 = pnand %p2032_p10, %p2780_p0 }
 0x3d6   : > { %1696 = vmatprep.subr.bf16.mxu0 %v2151_v0 }
 0x3d7   : > { %p2034_p9 = pneg %p2033_p4 }
 0x439   : > { %v948_v37 = vpop.xlane.xlu0 %947 }
 0x43a   : > { %1851 = vrcp.f32 %v948_v37 }
 0x441   : > { %v1080_v38 = vpop.xlane.xlu1 %1079 }
 0x442   : > { %1853 = vrcp.f32 %v1080_v38 }
 0x444   : > { %v1852_v39 = vpop.eup %1851 }
 0x445   : > { %v950_v40 = vmul.f32 %v1852_v39, %v1844_v20  ;;  %v1221_v47 = vpop.permute.xlu1 %1220 }
 0x446   : > { %v1226_v49 = vsel %vm834_vm4, %v1221_v47, 0 }
 0x447   : > { %v952_v41 = vpack.c.bf16 %v950_v40, %v950_v40  ;;  %v951_v50 = vadd.f32 %v950_v40, %v828_v33 }
 0x449   : > { %v1212_v42 = vpop.xlane.xlu0 %1211  ;;  %1687 = vmatmul.mubr.msk.bf16.vlgmr.msra.gmra.mrb[12].mxu0 %vm771_vm3, %v952_v41 }
 0x44a   : > { %1855 = vrcp.f32 %v1212_v42  ;;  %1698 = vmatprep.mubr.msk.bf16.mxu0 %vm2152_vm0, %v2151_v0 }
 0x44c   : > { %v1854_v43 = vpop.eup %1853 }
 0x44d   : > { %v1082_v44 = vmul.f32 %v1854_v43, %v1846_v25  ;;  %v1089_v45 = vpop.permute.xlu0 %1088 }
 0x44e   : > { %v1094_v46 = vsel %vm834_vm4, %v1089_v45, 0 }
 0x44f   : > { %1697 = vmatpush3.bf16.msra.mxu0 %v1094_v46  ;;  %v1084_v48 = vpack.c.bf16 %v1082_v44, %v1082_v44  ;;  %v1083_v52 = vadd.f32 %v1082_v44, %v951_v50 }
 0x450   : > { %1708 = vmatprep.subr.bf16.mxu0 %v2151_v0 }
 0x452   : > { %1699 = vmatmul.mubr.msk.bf16.vlgmr.msra.gmra.mrb[16].mxu0 %vm771_vm3, %v1084_v48 }
 0x453   : > { %1709 = vmatpush3.bf16.msra.mxu0 %v1226_v49  ;;  %1710 = vmatprep.mubr.msk.bf16.mxu0 %vm2152_vm0, %v2151_v0 }
 0x454   : > { %v1856_v51 = vpop.eup %1855 }
 0x455   : > { %v1214_v53 = vmul.f32 %v1856_v51, %v1848_v27 }
 0x457   : > { %v1215_v54 = vadd.f32 %v1214_v53, %v1083_v52  ;;  %v1216_v55 = vpack.c.bf16 %v1214_v53, %v1214_v53 }
 0x459   : > { %v1340_v56 = vmul.f32 0.25, %v1215_v54 }
 0x45a   : > { %1711 = vmatmul.mubr.msk.bf16.vlgmr.msra.gmra.mrb[20].mxu0 %vm771_vm3, %v1216_v55 }
 0x45b   : > { %1341 = vst.msk [vmem:[%s2606_s1] sm:$0xff] %vm771_vm3, %v1340_v56 }
 0x4a7   : > { %v872_v57 = vpop.f32.mrb[8].mxu0 }
 0x4a8   : > { %v878_v58 = vpack.c.bf16 %v872_v57, %v872_v57  ;;  %v1676_v59 = vpop.f32.mrb[9].mxu0 }
 0x4a9   : > { %v875_v60 = vpop.f32.mrb[10].mxu0 }
 0x4aa   : > { %880 = vst.msk [vmem:[#allocation5] sm:$0xf] %vm879_vm5, %v878_v58  ;;  %v1677_v61 = vpop.f32.mrb[11].mxu0 }
 0x51c   : > { %v998_v62 = vpop.f32.mrb[12].mxu0 }
 0x51d   : > { %v1611_v63 = vpack.c.bf16 %v998_v62, %v998_v62  ;;  %v1688_v1 = vpop.f32.mrb[13].mxu0 }
 0x51e   : > { %v1001_v2 = vpop.f32.mrb[14].mxu0 }
 0x51f   : > { %1008 = vrot.lane.b32.xlu1 %v1611_v63, %s2156_s15  ;;  %v1689_v3 = vpop.f32.mrb[15].mxu0  ;;  %s2037_s15 = scalar_lea.vmem %s2036_s3, 256 }
 0x520   : > { %p2039_p7 = scmp.lt.s32.totalorder %s2037_s15, %s2031_s28 }
 0x522   : > { %p2040_p3 = por %p2039_p7, %p2038_p13 }
 0x524   : > { %p2041_p5 = pnand %p2040_p3, %p2034_p9 }
 0x525   : > { %v1130_v5 = vpop.f32.mrb[16].mxu0 }
 0x526   : > { %v1612_v7 = vpack.c.bf16 %v1130_v5, %v1130_v5  ;;  %v1700_v8 = vpop.f32.mrb[17].mxu0 }
 0x527   : > { %v1133_v9 = vpop.f32.mrb[18].mxu0 }
 0x528   : > { %1140 = vrot.lane.b32.xlu0 %v1612_v7, %s2157_s16  ;;  %v1701_v10 = vpop.f32.mrb[19].mxu0 }
 0x52d   : > { %v1262_v11 = vpop.f32.mrb[20].mxu0 }
 0x52e   : > { %v1613_v12 = vpack.c.bf16 %v1262_v11, %v1262_v11  ;;  %v1712_v13 = vpop.f32.mrb[21].mxu0 }
 0x52f   : > { %v1265_v14 = vpop.f32.mrb[22].mxu0 }
 0x530   : > { %1272 = vrot.lane.b32.xlu1 %v1613_v12, %s2158_s27  ;;  %v1713_v15 = vpop.f32.mrb[23].mxu0 }
 0x591   : > { %v1009_v16 = vpop.permute.xlu1 %1008 }
 0x592   : > { %1012 = vst.msk [vmem:[#allocation5] sm:$0xf] %vm1011_vm6, %v1009_v16 }
 0x59a   : > { %v1141_v0 = vpop.permute.xlu0 %1140 }
 0x59b   : > { %1144 = vst.msk [vmem:[#allocation5] sm:$0xf] %vm1143_vm7, %v1141_v0 }
 0x5a2   : > { %v1273_v17 = vpop.permute.xlu1 %1272 }
 0x5a3   : > { %1276 = vst.msk [vmem:[#allocation5] sm:$0xf] %vm1275_vm8, %v1273_v17 }
 0x5aa   : > { %v1277_v18 = vld [vmem:[#allocation5] sm:$0xf] }
 0x5ab   : > { %1719 = vmatmul.mubr.msk.bf16.vlgmr.msra.gmra.mrb[20].mxu1 %vm580_vm1, %v1277_v18 }
 0x5ac   : > { %2044 = shalt.err (!%p2041_p5)
}
 0x5ad   : > { %s2045_s1 = scalar_lea.hbm %s2624_s24, 128  ;;  %s2049_s18 = scalar_lea.hbm %s2779_s4, 256 }
 0x5ae   : > { %p2046_p2 = scmp.ne.s32.totalorder %s2624_s24, %s2045_s1  ;;  %p2050_p12 = scmp.lt.u32.totalorder %s2624_s24, %s2779_s4 }
 0x5af   : > { %p2051_p1 = scmp.lt.u32.totalorder %s2049_s18, %s2045_s1  ;;  %p2053_p10 = scmp.lt.u32.totalorder %s2045_s1, %s2624_s24 }
 0x5b0   : > { %p2047_p8 = pnand %p2046_p2, %p2780_p0 }
 0x5b1   : > { %p2052_p6 = por %p2051_p1, %p2050_p12 }
 0x5b2   : > { %p2048_p11 = pneg %p2047_p8 }
 0x5b3   : > { %p2054_p4 = por %p2053_p10, %p2052_p6 }
 0x5b5   : > { %p2055_p9 = pnand %p2054_p4, %p2048_p11 }
 0x5b7   : > { %2058 = shalt.err (!%p2055_p9)
}
 0x5b8   : > { %1741 = dma.vmem_to_hbm [thread:$0]  (%p2780_p0), %s1375_s30, 128, %s2624_s24, %s1348_s20  }
 0x5b9   : > { %s2781_s11 = sld [smem:[#allocation36_spill]]  ;;  %s545_s28 = scalar_lea.vmem [#allocation17], %s1567_s14 }
 0x5ba   : > { %s1361_s10 = sshll.u32 %s545_s28, 4  ;;  %s2782_s1 = sld [smem:[#allocation37_spill]]  ;;  %s2657_s10 = int_to_ptr.vmem [resolvable:$true] %s1361_s10 }
 0x5bb   : > { %s1343_s14 = scalar_lea.sflag [#allocation8], %s2483_s26  ;;  %s2059_s24 = scalar_lea.vmem %s2657_s10, 128 }
 0x5bc   : > { %p2060_p13 = scmp.ne.s32.totalorder %s2657_s10, %s2059_s24  ;;  %s2160_s25 = smov [#allocation17]  }
 0x5bd   : > { %s2063_s30 = sshll.u32 %s2160_s25, 4  ;;  %s2064_s30 = int_to_ptr.vmem [resolvable:$false] %s2063_s30 }
 0x5be   : > { %p2061_p7 = pnand %p2060_p13, %p2780_p0  ;;  %p2066_p5 = scmp.lt.s32.totalorder %s2657_s10, %s2064_s30 }
 0x5bf   : > { %v1601_v19 = vld [vmem:[%s2781_s11] ss:$0 sm:$0xff] }
 0x5c0   : > { %s2655_s9 = scalar_lea.hbm %s2782_s1, %s1607_s21  ;;  %p2062_p3 = pneg %p2061_p7 }
 0x5c1   : > { %s2065_s21 = scalar_lea.vmem %s2064_s30, 256 }
 0x5c2   : > { %p2067_p2 = scmp.lt.s32.totalorder %s2065_s21, %s2059_s24 }
 0x5c4   : > { %p2068_p8 = por %p2067_p2, %p2066_p5 }
 0x5c6   : > { %p2069_p11 = pnand %p2068_p8, %p2062_p3 }
 0x67e   : > { %v1333_v20 = vpop.f32.mrb[20].mxu1 }
 0x67f   : > { %v1334_v21 = vadd.f32 %v1601_v19, %v1333_v20  ;;  %v1720_v22 = vpop.f32.mrb[21].mxu1 }
 0x680   : > { %v1336_v23 = vpop.f32.mrb[22].mxu1 }
 0x681   : > { %v1721_v24 = vpop.f32.mrb[23].mxu1  ;;  %1339 = vst.msk [vmem:[%s545_s28] sm:$0xff] %vm580_vm1, %v1334_v21 }
 0x682   : > { %2072 = shalt.err (!%p2069_p11)
}
 0x683   : > { %s2073_s26 = scalar_lea.hbm %s2655_s9, 128  ;;  %s2077_s18 = scalar_lea.hbm %s2782_s1, 256 }
 0x684   : > { %p2074_p12 = scmp.ne.s32.totalorder %s2655_s9, %s2073_s26  ;;  %p2078_p10 = scmp.lt.u32.totalorder %s2655_s9, %s2782_s1 }
 0x685   : > { %p2079_p4 = scmp.lt.u32.totalorder %s2077_s18, %s2073_s26  ;;  %p2081_p13 = scmp.lt.u32.totalorder %s2073_s26, %s2655_s9 }
 0x686   : > { %p2075_p1 = pnand %p2074_p12, %p2780_p0 }
 0x687   : > { %p2080_p9 = por %p2079_p4, %p2078_p10 }
 0x688   : > { %p2076_p6 = pneg %p2075_p1 }
 0x689   : > { %p2082_p7 = por %p2081_p13, %p2080_p9 }
 0x68b   : > { %p2083_p3 = pnand %p2082_p7, %p2076_p6 }
 0x68d   : > { %2086 = shalt.err (!%p2083_p3)
}
 0x68e   : > { %1740 = dma.vmem_to_hbm [thread:$0]  (%p2780_p0), %s2657_s10, 128, %s2655_s9, %s1343_s14  }
 0x68f PF: > { %s2783_s27 = sld [smem:[#allocation26_spill]]  ;;  %s2784_s12 = sld [smem:[#allocation28_spill]] }
 0x690   : > { %s2785_s11 = sld [smem:[#allocation27_spill]] }
 0x695   : > { %s1386_s28 = sand.u32 1, %s2783_s27   ;;  %p2786_p5 = scmp.ne.s32.totalorder %s2784_s12, 0 }
 0x696   : > { %p2787_p2 = scmp.ge.s32.totalorder %s2785_s11, 2  ;;  %s1387_s3 = scalar_lea.sflag [#allocation8], %s1386_s28 }
 0x698   : > { %p1765_p8 = pnand %p2787_p2, %p2786_p5 }
 0x69a   : > { %2120 = dma.done.wait (!%p1765_p8), %s1387_s3, 128  }
 0x69b   : > { %2122 = vsyncadd (!%p1765_p8), %s1387_s3, 4294967168  ;;  %s1396_s15 = scalar_lea.sflag [#allocation19], %s1386_s28 }
 0x69c   : > { %2124 = dma.done.wait (!%p1765_p8), %s1396_s15, 128  }
 0x69d   : > { %2126 = vsyncadd (!%p1765_p8), %s1396_s15, 4294967168  ;;  %s2788_s24 = sld [smem:[#allocation29_spill]]  ;;  %s2789_s17 = sld [smem:[#allocation30_spill]] }
 0x69e   : > { %s2790_s21 = smov %s2133_s22  ;;  %s2791_s22 = smov %s2137_s23 }
 0x6a3   : > { %p34_p0 = scmp.ge.s32.totalorder %s2788_s24, 4   ;;  %s2792_s23 = smov %s2789_s17 }
 0x6a5   :  { %36 = sbr.rel (!%p34_p0) target bundleno = 19 (0x13), region = 162 }
 0x6ac   :  { %1401 = vsyncpa [#allocation7], 1 }
 0x6ad   :  { %1403 = vsyncpa [#allocation7 + $0x1], 1 }
 0x6ae   :  { %1404 = vsyncpa [#allocation10], 1 }
 0x6af   :  { %1406 = vsyncpa [#allocation10 + $0x1], 1 }
 0x6b0   :  { %1407 = vsyncpa [#allocation13], 1 }
 0x6b1   :  { %1408 = vsyncpa [#allocation16], 1 }
 0x6b2   :  { %1409 = vsyncpa [#allocation8], 1 }
 0x6b3   :  { %1411 = vsyncpa [#allocation8 + $0x1], 1 }
 0x6b4   :  { %1412 = vsyncpa [#allocation19], 1 }
 0x6b5   :  { %1414 = vsyncpa [#allocation19 + $0x1], 1 }

</bundles_post_ra>
